<compile_context>
chip_gen: v6e
topology: v6e:2x2x1
jax: 0.10.0
libtpu: 0.0.40
codegen_flags: <defaults>
</compile_context>

<pallas_src>
import functools

import jax
import jax.numpy as jnp
from jax import lax
from jax.experimental import pallas as pl
from jax.experimental.pallas import tpu as pltpu


def _alternating_kernel(
    freq_ref,      # (Bblk*2*Cin,  HW) f32   raw input (BN folded into weights)
    freq0_ref,     # (Bblk*2*Cout, HW) f32   residual
    img0_ref,      # (Bblk*2*Cout, HW) f32   residual
    wf_ref,        # (2*Cout, 9*2*Cin)  bf16 conv_freq im2col weight (BN-scaled)
    biasf_ref,     # (2*Cout, HW) f32        conv_freq per-pixel bias map
    wi_ref,        # (2*Cout, 9*2*Cout) bf16 conv_img  im2col weight (BN-scaled)
    biasi_ref,     # (2*Cout, HW) f32        conv_img  per-pixel bias map
    masks_ref,     # (9, HW) f32             3x3 'same' boundary masks
    dftcs_ref,     # (HW, 2*HW) bf16         [cos(2*pi*theta) | sin(2*pi*theta)]
    sgn_ref,       # (Bblk*2*Cout, 1) f32    +1 on real rows, -1 on imag rows
    freq_out_ref,  # (Bblk*2*Cout, HW) f32
    img_out_ref,   # (Bblk*2*Cout, HW) f32
    *, H, W, Cin, Cout, Bblk,
):
    HW = H * W
    C2in, C2out = 2 * Cin, 2 * Cout
    M = Bblk * C2out
    masks = masks_ref[...]
    sgn = sgn_ref[...]                    # (M, 1), precomputed on host
    sel_real = sgn > 0.0

    def conv3x3(x_all, cin2, w_ref, bias_ref):
        # x_all: (Bblk*cin2, HW).  One im2col matmul per batch element:
        # (2*Cout, 9*cin2) @ (9*cin2, HW).  Taps are built with lane rolls +
        # precomputed boundary masks (zero 'same' pad), no padded scratch slab.
        w = w_ref[...]
        bias = bias_ref[...]
        outs = []
        for b in range(Bblk):
            xb = x_all[b * cin2:(b + 1) * cin2, :]          # tile-aligned slice
            taps = []
            for kh in range(3):
                for kw in range(3):
                    k = kh * 3 + kw
                    off = (kh - 1) * W + (kw - 1)           # flat spatial shift
                    if off == 0:
                        taps.append(xb)                     # center tap, valid
                    else:
                        # t[:, p] = x[:, (p + off) % HW]; wrapped lanes masked.
                        t = pltpu.roll(xb, shift=(-off) % HW, axis=1)
                        taps.append(t * masks[k:k + 1, :])
            taps = jnp.concatenate(taps, axis=0).astype(jnp.bfloat16)
            outs.append(jnp.dot(w, taps, preferred_element_type=jnp.float32)
                        + bias)
        return jnp.concatenate(outs, axis=0)

    def complex_dft(x, inverse):
        # x: (M, HW); each batch block's rows are [Cout real ; Cout imag].
        # Single fused matmul against [cos | sin]:  t1 = x@cos, t2 = x@sin.
        t = jnp.dot(x.astype(jnp.bfloat16), dftcs_ref[...],
                    preferred_element_type=jnp.float32)     # (M, 2*HW)
        t1 = t[:, :HW]
        t2 = t[:, HW:]
        # Swap each batch block's real/imag halves of t2 (sublane rolls; the
        # wrapped-around rows are never selected).
        swapped = jnp.where(sel_real,
                            pltpu.roll(t2, shift=M - Cout, axis=0),
                            pltpu.roll(t2, shift=Cout, axis=0))
        if inverse:                       # (re + i*im) @ (cos + i*sin) / HW
            return (t1 - sgn * swapped) * (1.0 / HW)
        return t1 + sgn * swapped         # (re + i*im) @ (cos - i*sin)

    # ---- conv_freq (BN folded into weights/bias map) + act + residual ----
    fconv = conv3x3(freq_ref[...], C2in, wf_ref, biasf_ref)
    # TODO(synk): `modified_act_fn` is referenced but not defined in the given
    # source; using ReLU as a deterministic stand-in.
    fconv = jnp.maximum(fconv, 0.0) + freq0_ref[...]

    # ---- ifft2: one complex-DFT matmul (M = Bblk*2*Cout rows) ----
    img = complex_dft(fconv, inverse=True)
    img_out_ref[...] = img                # single full (unmasked) store

    # ---- conv_img (bn_img folded) + ReLU + residual, on live values ----
    iconv = conv3x3(img, C2out, wi_ref, biasi_ref)
    iconv = jnp.maximum(iconv, 0.0) + img0_ref[...]

    # ---- fft2 ----
    freq_out_ref[...] = complex_dft(iconv, inverse=False)


def _dft_cos_sin(H, W):
    """(H*W, 2*H*W) bf16 slab [cos(2*pi*theta) | sin(2*pi*theta)] for the
    flattened symmetric 2-D DFT.  Forward/inverse are derived in-kernel via a
    sign flip and a 1/(H*W) scale, so only this one slab is resident."""
    hh = jnp.arange(H, dtype=jnp.float32)
    ww = jnp.arange(W, dtype=jnp.float32)
    ph = jnp.outer(hh, hh) / H                                # (H, H)
    pw = jnp.outer(ww, ww) / W                                # (W, W)
    theta = ph[:, None, :, None] + pw[None, :, None, :]       # (H, W, H, W)
    theta = (2.0 * jnp.pi) * theta.reshape(H * W, H * W)
    return jnp.concatenate([jnp.cos(theta), jnp.sin(theta)],
                           axis=1).astype(jnp.bfloat16)


def _conv_masks(H, W):
    """(9, H*W) f32 validity masks for the 3x3 'same' conv taps (zero pad)."""
    h = jnp.arange(H)[:, None]
    w = jnp.arange(W)[None, :]
    ms = []
    for kh in range(3):
        for kw in range(3):
            dh, dw = kh - 1, kw - 1
            m = ((h + dh >= 0) & (h + dh < H) & (w + dw >= 0) & (w + dw < W))
            ms.append(m.reshape(H * W))
    return jnp.stack(ms, axis=0).astype(jnp.float32)


def _pick_bblk(B, c2out, target_rows=256):
    """Largest useful batch block: push the DFT matmul toward `target_rows`
    MXU rows while keeping >= 2 grid steps (so both v7x TCs get work)."""
    best = 1
    for d in range(1, B + 1):
        if B % d:
            continue
        if B >= 2 and B // d < 2:
            continue
        best = d
        if d * c2out >= target_rows:
            break
    return best


def alternating_layer(freq, freq0, img0, params, block_batch=None):
    """freq: (B, 2, Cin, H, W); freq0/img0: (B, 2, Cout, H, W).
    `params` holds PyTorch-layout conv weights (OIHW) + folded eval-mode BN
    affines. Returns (freq_out, img_out), both (B, 2, Cout, H, W)."""
    B, two, Cin, H, W = freq.shape
    assert two == 2
    Cout = freq0.shape[2]
    C2in, C2out, HW = 2 * Cin, 2 * Cout, H * W

    bblk = block_batch if block_batch is not None else _pick_bblk(B, C2out)
    assert B % bblk == 0
    G = B // bblk
    M = bblk * C2out

    # glue: channels-first + flattened spatial is the native PyTorch order, so
    # these are pure reshapes (no transposes / relayouts).
    freq_f = freq.reshape(G, bblk * C2in, HW)
    freq0_f = freq0.reshape(G, M, HW)
    img0_f = img0.reshape(G, M, HW)

    masks = _conv_masks(H, W)                                  # (9, HW) f32

    # Fold eval-mode BN: scale into the im2col weight columns, shift + conv
    # bias into a per-pixel bias map (computed through the zero-pad conv so
    # image-border effects are exact).
    def fold(w_oihw, bias, bn_s, bn_b):
        O = w_oihw.shape[0]
        w_scaled = w_oihw * bn_s[None, :, None, None]
        w_im2col = (w_scaled.transpose(0, 2, 3, 1)
                    .reshape(O, -1).astype(jnp.bfloat16))      # (O, 9*I)
        tap_sum = jnp.einsum("oihw,i->ohw", w_oihw, bn_b).reshape(O, 9)
        bias_map = bias[:, None] + tap_sum @ masks             # (O, HW)
        return w_im2col, bias_map.astype(jnp.float32)

    wf_c, biasf = fold(params["wf"], params["bf"],
                       params["bnf_s"], params["bnf_b"])
    wi_c, biasi = fold(params["wi"], params["bi"],
                       params["bni_s"], params["bni_b"])

    dft_cs = _dft_cos_sin(H, W)                                # (HW, 2*HW) bf16

    # +1 on real-part rows, -1 on imag-part rows (per batch block of 2*Cout).
    sgn = jnp.tile(
        jnp.concatenate([jnp.ones((Cout,), jnp.float32),
                         -jnp.ones((Cout,), jnp.float32)]), bblk).reshape(M, 1)

    def const(*shape):
        return pl.BlockSpec(shape, lambda g: (0,) * len(shape))

    in_specs = [
        pl.BlockSpec((None, bblk * C2in, HW), lambda g: (g, 0, 0)),
        pl.BlockSpec((None, M, HW), lambda g: (g, 0, 0)),
        pl.BlockSpec((None, M, HW), lambda g: (g, 0, 0)),
        const(C2out, 9 * C2in), const(C2out, HW),
        const(C2out, 9 * C2out), const(C2out, HW),
        const(9, HW),
        const(HW, 2 * HW),
        const(M, 1),
    ]
    out_specs = [
        pl.BlockSpec((None, M, HW), lambda g: (g, 0, 0)),
        pl.BlockSpec((None, M, HW), lambda g: (g, 0, 0)),
    ]
    out_shape = [
        jax.ShapeDtypeStruct((G, M, HW), jnp.float32),
        jax.ShapeDtypeStruct((G, M, HW), jnp.float32),
    ]

    # Advisory cost estimate so XLA schedules surrounding ops sensibly.
    flops_per_b = (2 * (2 * C2out * HW * (2 * HW))      # ifft2 + fft2 matmuls
                   + 2 * C2out * (9 * C2in) * HW        # conv_freq
                   + 2 * C2out * (9 * C2out) * HW)      # conv_img
    bytes_accessed = (4 * (freq_f.size + freq0_f.size + img0_f.size
                           + 2 * G * M * HW + masks.size + biasf.size
                           + biasi.size + sgn.size)
                      + 2 * (dft_cs.size + wf_c.size + wi_c.size))

    kernel = functools.partial(_alternating_kernel, H=H, W=W,
                               Cin=Cin, Cout=Cout, Bblk=bblk)
    freq_out_f, img_out_f = pl.pallas_call(
        kernel,
        grid_spec=pltpu.PrefetchScalarGridSpec(
            num_scalar_prefetch=0, grid=(G,),
            in_specs=in_specs, out_specs=out_specs),
        out_shape=out_shape,
        compiler_params=pltpu.CompilerParams(
            dimension_semantics=("parallel",)),
        cost_estimate=pl.CostEstimate(flops=int(B * flops_per_b),
                                      transcendentals=0,
                                      bytes_accessed=int(bytes_accessed)),
    )(freq_f, freq0_f, img0_f, wf_c, biasf, wi_c, biasi, masks, dft_cs, sgn)

    return (freq_out_f.reshape(B, 2, Cout, H, W),
            img_out_f.reshape(B, 2, Cout, H, W))


def _reference(freq, freq0, img0, bnf_s, bnf_b, wf_pt, bf, bni_s, bni_b,
               wi_pt, bi):
    """Pure-JAX reference mirroring the PyTorch forward (eval-mode BN)."""
    B, _, Cin, H, W = freq.shape
    Cout = freq0.shape[2]
    x = freq.reshape(B, 2 * Cin, H, W)
    x = x * bnf_s[None, :, None, None] + bnf_b[None, :, None, None]
    y = lax.conv_general_dilated(x, wf_pt, (1, 1), "SAME",
                                 dimension_numbers=("NCHW", "OIHW", "NCHW"))
    y = jnp.maximum(y + bf[None, :, None, None], 0.0)
    y = y.reshape(B, 2, Cout, H, W) + freq0
    img_c = jnp.fft.ifft2(y[:, 0] + 1j * y[:, 1])
    img_out = jnp.stack([img_c.real, img_c.imag], axis=1).astype(jnp.float32)
    z = img_out.reshape(B, 2 * Cout, H, W)
    z = z * bni_s[None, :, None, None] + bni_b[None, :, None, None]
    w = lax.conv_general_dilated(z, wi_pt, (1, 1), "SAME",
                                 dimension_numbers=("NCHW", "OIHW", "NCHW"))
    w = jnp.maximum(w + bi[None, :, None, None], 0.0)
    w = w.reshape(B, 2, Cout, H, W) + img0
    fo_c = jnp.fft.fft2(w[:, 0] + 1j * w[:, 1])
    freq_out = jnp.stack([fo_c.real, fo_c.imag], axis=1).astype(jnp.float32)
    return freq_out, img_out


if __name__ == "__main__":
    # B=4 so the batch-block path (Bblk=2) is exercised while keeping 2 grid
    # steps for v7x's two TensorCores.
    B, Cin, Cout, H, W = 4, 4, 4, 16, 16
    f32 = jnp.float32
    key = jax.random.PRNGKey(0)
    ks = jax.random.split(key, 15)

    # inputs: freq is (B, 2, Cin, H, W) — real/imag stacked on dim 1
    freq = jax.random.normal(ks[0], (B, 2, Cin, H, W), f32)
    freq0 = 0.1 * jax.random.normal(ks[1], (B, 2, Cout, H, W), f32)
    img0 = 0.1 * jax.random.normal(ks[2], (B, 2, Cout, H, W), f32)

    # deterministic parameter init (BatchNorm in inference mode: folded affine)
    eps = 1e-5
    gamma_f = jax.random.uniform(ks[3], (2 * Cin,), f32, 0.5, 1.5)
    beta_f = 0.1 * jax.random.normal(ks[4], (2 * Cin,), f32)
    mean_f = 0.1 * jax.random.normal(ks[5], (2 * Cin,), f32)
    var_f = jax.random.uniform(ks[6], (2 * Cin,), f32, 0.5, 1.5)
    gamma_i = jax.random.uniform(ks[7], (2 * Cout,), f32, 0.5, 1.5)
    beta_i = 0.1 * jax.random.normal(ks[8], (2 * Cout,), f32)
    mean_i = 0.1 * jax.random.normal(ks[9], (2 * Cout,), f32)
    var_i = jax.random.uniform(ks[10], (2 * Cout,), f32, 0.5, 1.5)

    wf_pt = jax.random.normal(ks[11], (2 * Cout, 2 * Cin, 3, 3), f32) \
        / (3.0 * jnp.sqrt(2.0 * Cin))
    bf = 0.1 * jax.random.normal(ks[12], (2 * Cout,), f32)
    wi_pt = jax.random.normal(ks[13], (2 * Cout, 2 * Cout, 3, 3), f32) \
        / (3.0 * jnp.sqrt(2.0 * Cout))
    bi = 0.1 * jax.random.normal(ks[14], (2 * Cout,), f32)

    bnf_s = gamma_f / jnp.sqrt(var_f + eps)
    bnf_b = beta_f - mean_f * bnf_s
    bni_s = gamma_i / jnp.sqrt(var_i + eps)
    bni_b = beta_i - mean_i * bni_s

    params = dict(bnf_s=bnf_s, bnf_b=bnf_b, wf=wf_pt, bf=bf,
                  bni_s=bni_s, bni_b=bni_b, wi=wi_pt, bi=bi)

    freq_out, img_out = alternating_layer(freq, freq0, img0, params)
    jax.block_until_ready((freq_out, img_out))

    # sanity check against a pure-JAX reference (bf16 MXU operands -> generous
    # but comfortably met fp tolerance)
    ref_freq_out, ref_img_out = _reference(freq, freq0, img0,
                                           bnf_s, bnf_b, wf_pt, bf,
                                           bni_s, bni_b, wi_pt, bi)

    def rel_max_err(a, b):
        return float(jnp.max(jnp.abs(a - b)) / (jnp.max(jnp.abs(b)) + 1e-6))

    assert rel_max_err(img_out, ref_img_out) < 5e-2
    assert rel_max_err(freq_out, ref_freq_out) < 5e-2
    print("KERNEL_OK")
</pallas_src>

<mosaic_0001>
module attributes {stable_mosaic.version = 11 : i64} {
  func.func @_alternating_kernel(%arg0: i32, %arg1: memref<1x16x256xf32, #tpu.memory_space<vmem>>, %arg2: memref<1x16x256xf32, #tpu.memory_space<vmem>>, %arg3: memref<1x16x256xf32, #tpu.memory_space<vmem>>, %arg4: memref<8x72xbf16, #tpu.memory_space<vmem>>, %arg5: memref<8x256xf32, #tpu.memory_space<vmem>>, %arg6: memref<8x72xbf16, #tpu.memory_space<vmem>>, %arg7: memref<8x256xf32, #tpu.memory_space<vmem>>, %arg8: memref<9x256xf32, #tpu.memory_space<vmem>>, %arg9: memref<256x512xbf16, #tpu.memory_space<vmem>>, %arg10: memref<16x1xf32, #tpu.memory_space<vmem>>, %arg11: memref<1x16x256xf32, #tpu.memory_space<vmem>>, %arg12: memref<1x16x256xf32, #tpu.memory_space<vmem>>) attributes {dimension_semantics = [#tpu.dimension_semantics<parallel>], iteration_bounds = array<i64: 2>, scalar_prefetch = 0 : i64, scratch_operands = 0 : i64, tpu.core_type = #tpu.core_type<tc>, window_params = [{transform_indices = @transform_0, window_bounds = array<i64: 1, 16, 256>}, {transform_indices = @transform_1, window_bounds = array<i64: 1, 16, 256>}, {transform_indices = @transform_2, window_bounds = array<i64: 1, 16, 256>}, {pipeline_mode = #tpu.pipeline_mode<synchronous>, transform_indices = @transform_3, window_bounds = array<i64: 8, 72>}, {pipeline_mode = #tpu.pipeline_mode<synchronous>, transform_indices = @transform_4, window_bounds = array<i64: 8, 256>}, {pipeline_mode = #tpu.pipeline_mode<synchronous>, transform_indices = @transform_5, window_bounds = array<i64: 8, 72>}, {pipeline_mode = #tpu.pipeline_mode<synchronous>, transform_indices = @transform_6, window_bounds = array<i64: 8, 256>}, {pipeline_mode = #tpu.pipeline_mode<synchronous>, transform_indices = @transform_7, window_bounds = array<i64: 9, 256>}, {pipeline_mode = #tpu.pipeline_mode<synchronous>, transform_indices = @transform_8, window_bounds = array<i64: 256, 512>}, {pipeline_mode = #tpu.pipeline_mode<synchronous>, transform_indices = @transform_9, window_bounds = array<i64: 16, 1>}, {transform_indices = @transform_10, window_bounds = array<i64: 1, 16, 256>}, {transform_indices = @transform_11, window_bounds = array<i64: 1, 16, 256>}]} {
    %c0 = arith.constant 0 : index
    %c0_0 = arith.constant 0 : index
    %0 = vector.load %arg8[%c0, %c0_0] : memref<9x256xf32, #tpu.memory_space<vmem>>, vector<9x256xf32>
    %c0_1 = arith.constant 0 : index
    %c0_2 = arith.constant 0 : index
    %1 = vector.load %arg10[%c0_1, %c0_2] : memref<16x1xf32, #tpu.memory_space<vmem>>, vector<16x1xf32>
    %cst = arith.constant 0.000000e+00 : f32
    %2 = vector.broadcast %cst : f32 to vector<16x1xf32>
    %3 = arith.cmpf ogt, %1, %2 : vector<16x1xf32>
    %c0_3 = arith.constant 0 : index
    %c0_4 = arith.constant 0 : index
    %c0_5 = arith.constant 0 : index
    %4 = vector.load %arg1[%c0_3, %c0_4, %c0_5] : memref<1x16x256xf32, #tpu.memory_space<vmem>>, vector<1x16x256xf32>
    %5 = vector.shape_cast %4 : vector<1x16x256xf32> to vector<16x256xf32>
    %c0_6 = arith.constant 0 : index
    %c0_7 = arith.constant 0 : index
    %6 = vector.load %arg4[%c0_6, %c0_7] : memref<8x72xbf16, #tpu.memory_space<vmem>>, vector<8x72xbf16>
    %c0_8 = arith.constant 0 : index
    %c0_9 = arith.constant 0 : index
    %7 = vector.load %arg5[%c0_8, %c0_9] : memref<8x256xf32, #tpu.memory_space<vmem>>, vector<8x256xf32>
    %8 = vector.extract_strided_slice %5 {offsets = [0, 0], sizes = [8, 256], strides = [1, 1]} : vector<16x256xf32> to vector<8x256xf32>
    %c17_i32 = arith.constant 17 : i32
    %9 = tpu.dynamic_rotate %8 by %c17_i32 dim 1 : vector<8x256xf32>, i32 -> vector<8x256xf32>
    %10 = vector.extract_strided_slice %0 {offsets = [0, 0], sizes = [1, 256], strides = [1, 1]} : vector<9x256xf32> to vector<1x256xf32>
    %11 = vector.broadcast %10 : vector<1x256xf32> to vector<8x256xf32>
    %12 = arith.mulf %9, %11 : vector<8x256xf32>
    %c16_i32 = arith.constant 16 : i32
    %13 = tpu.dynamic_rotate %8 by %c16_i32 dim 1 : vector<8x256xf32>, i32 -> vector<8x256xf32>
    %14 = vector.extract_strided_slice %0 {offsets = [1, 0], sizes = [1, 256], strides = [1, 1]} : vector<9x256xf32> to vector<1x256xf32>
    %15 = vector.broadcast %14 : vector<1x256xf32> to vector<8x256xf32>
    %16 = arith.mulf %13, %15 : vector<8x256xf32>
    %c15_i32 = arith.constant 15 : i32
    %17 = tpu.dynamic_rotate %8 by %c15_i32 dim 1 : vector<8x256xf32>, i32 -> vector<8x256xf32>
    %18 = vector.extract_strided_slice %0 {offsets = [2, 0], sizes = [1, 256], strides = [1, 1]} : vector<9x256xf32> to vector<1x256xf32>
    %19 = vector.broadcast %18 : vector<1x256xf32> to vector<8x256xf32>
    %20 = arith.mulf %17, %19 : vector<8x256xf32>
    %c1_i32 = arith.constant 1 : i32
    %21 = tpu.dynamic_rotate %8 by %c1_i32 dim 1 : vector<8x256xf32>, i32 -> vector<8x256xf32>
    %22 = vector.extract_strided_slice %0 {offsets = [3, 0], sizes = [1, 256], strides = [1, 1]} : vector<9x256xf32> to vector<1x256xf32>
    %23 = vector.broadcast %22 : vector<1x256xf32> to vector<8x256xf32>
    %24 = arith.mulf %21, %23 : vector<8x256xf32>
    %c255_i32 = arith.constant 255 : i32
    %25 = tpu.dynamic_rotate %8 by %c255_i32 dim 1 : vector<8x256xf32>, i32 -> vector<8x256xf32>
    %26 = vector.extract_strided_slice %0 {offsets = [5, 0], sizes = [1, 256], strides = [1, 1]} : vector<9x256xf32> to vector<1x256xf32>
    %27 = vector.broadcast %26 : vector<1x256xf32> to vector<8x256xf32>
    %28 = arith.mulf %25, %27 : vector<8x256xf32>
    %c241_i32 = arith.constant 241 : i32
    %29 = tpu.dynamic_rotate %8 by %c241_i32 dim 1 : vector<8x256xf32>, i32 -> vector<8x256xf32>
    %30 = vector.extract_strided_slice %0 {offsets = [6, 0], sizes = [1, 256], strides = [1, 1]} : vector<9x256xf32> to vector<1x256xf32>
    %31 = vector.broadcast %30 : vector<1x256xf32> to vector<8x256xf32>
    %32 = arith.mulf %29, %31 : vector<8x256xf32>
    %c240_i32 = arith.constant 240 : i32
    %33 = tpu.dynamic_rotate %8 by %c240_i32 dim 1 : vector<8x256xf32>, i32 -> vector<8x256xf32>
    %34 = vector.extract_strided_slice %0 {offsets = [7, 0], sizes = [1, 256], strides = [1, 1]} : vector<9x256xf32> to vector<1x256xf32>
    %35 = vector.broadcast %34 : vector<1x256xf32> to vector<8x256xf32>
    %36 = arith.mulf %33, %35 : vector<8x256xf32>
    %c239_i32 = arith.constant 239 : i32
    %37 = tpu.dynamic_rotate %8 by %c239_i32 dim 1 : vector<8x256xf32>, i32 -> vector<8x256xf32>
    %38 = vector.extract_strided_slice %0 {offsets = [8, 0], sizes = [1, 256], strides = [1, 1]} : vector<9x256xf32> to vector<1x256xf32>
    %39 = vector.broadcast %38 : vector<1x256xf32> to vector<8x256xf32>
    %40 = arith.mulf %37, %39 : vector<8x256xf32>
    %41 = tpu.concatenate %12, %16, %20, %24, %8, %28, %32, %36, %40 in 0 : vector<8x256xf32>, vector<8x256xf32>, vector<8x256xf32>, vector<8x256xf32>, vector<8x256xf32>, vector<8x256xf32>, vector<8x256xf32>, vector<8x256xf32>, vector<8x256xf32> -> vector<72x256xf32>
    %42 = arith.truncf %41 : vector<72x256xf32> to vector<72x256xbf16>
    %cst_10 = arith.constant dense<0.000000e+00> : vector<8x256xf32>
    %43 = tpu.matmul %6, %42, %cst_10 {dimension_numbers = #tpu.dot_dimension_numbers<[1], [0], [0], [1], [0, 0, 1, 1], [], []>} : vector<8x72xbf16>, vector<72x256xbf16>, vector<8x256xf32> -> vector<8x256xf32>
    %44 = arith.addf %43, %7 : vector<8x256xf32>
    %45 = vector.extract_strided_slice %5 {offsets = [8, 0], sizes = [8, 256], strides = [1, 1]} : vector<16x256xf32> to vector<8x256xf32>
    %c17_i32_11 = arith.constant 17 : i32
    %46 = tpu.dynamic_rotate %45 by %c17_i32_11 dim 1 : vector<8x256xf32>, i32 -> vector<8x256xf32>
    %47 = vector.extract_strided_slice %0 {offsets = [0, 0], sizes = [1, 256], strides = [1, 1]} : vector<9x256xf32> to vector<1x256xf32>
    %48 = vector.broadcast %47 : vector<1x256xf32> to vector<8x256xf32>
    %49 = arith.mulf %46, %48 : vector<8x256xf32>
    %c16_i32_12 = arith.constant 16 : i32
    %50 = tpu.dynamic_rotate %45 by %c16_i32_12 dim 1 : vector<8x256xf32>, i32 -> vector<8x256xf32>
    %51 = vector.extract_strided_slice %0 {offsets = [1, 0], sizes = [1, 256], strides = [1, 1]} : vector<9x256xf32> to vector<1x256xf32>
    %52 = vector.broadcast %51 : vector<1x256xf32> to vector<8x256xf32>
    %53 = arith.mulf %50, %52 : vector<8x256xf32>
    %c15_i32_13 = arith.constant 15 : i32
    %54 = tpu.dynamic_rotate %45 by %c15_i32_13 dim 1 : vector<8x256xf32>, i32 -> vector<8x256xf32>
    %55 = vector.extract_strided_slice %0 {offsets = [2, 0], sizes = [1, 256], strides = [1, 1]} : vector<9x256xf32> to vector<1x256xf32>
    %56 = vector.broadcast %55 : vector<1x256xf32> to vector<8x256xf32>
    %57 = arith.mulf %54, %56 : vector<8x256xf32>
    %c1_i32_14 = arith.constant 1 : i32
    %58 = tpu.dynamic_rotate %45 by %c1_i32_14 dim 1 : vector<8x256xf32>, i32 -> vector<8x256xf32>
    %59 = vector.extract_strided_slice %0 {offsets = [3, 0], sizes = [1, 256], strides = [1, 1]} : vector<9x256xf32> to vector<1x256xf32>
    %60 = vector.broadcast %59 : vector<1x256xf32> to vector<8x256xf32>
    %61 = arith.mulf %58, %60 : vector<8x256xf32>
    %c255_i32_15 = arith.constant 255 : i32
    %62 = tpu.dynamic_rotate %45 by %c255_i32_15 dim 1 : vector<8x256xf32>, i32 -> vector<8x256xf32>
    %63 = vector.extract_strided_slice %0 {offsets = [5, 0], sizes = [1, 256], strides = [1, 1]} : vector<9x256xf32> to vector<1x256xf32>
    %64 = vector.broadcast %63 : vector<1x256xf32> to vector<8x256xf32>
    %65 = arith.mulf %62, %64 : vector<8x256xf32>
    %c241_i32_16 = arith.constant 241 : i32
    %66 = tpu.dynamic_rotate %45 by %c241_i32_16 dim 1 : vector<8x256xf32>, i32 -> vector<8x256xf32>
    %67 = vector.extract_strided_slice %0 {offsets = [6, 0], sizes = [1, 256], strides = [1, 1]} : vector<9x256xf32> to vector<1x256xf32>
    %68 = vector.broadcast %67 : vector<1x256xf32> to vector<8x256xf32>
    %69 = arith.mulf %66, %68 : vector<8x256xf32>
    %c240_i32_17 = arith.constant 240 : i32
    %70 = tpu.dynamic_rotate %45 by %c240_i32_17 dim 1 : vector<8x256xf32>, i32 -> vector<8x256xf32>
    %71 = vector.extract_strided_slice %0 {offsets = [7, 0], sizes = [1, 256], strides = [1, 1]} : vector<9x256xf32> to vector<1x256xf32>
    %72 = vector.broadcast %71 : vector<1x256xf32> to vector<8x256xf32>
    %73 = arith.mulf %70, %72 : vector<8x256xf32>
    %c239_i32_18 = arith.constant 239 : i32
    %74 = tpu.dynamic_rotate %45 by %c239_i32_18 dim 1 : vector<8x256xf32>, i32 -> vector<8x256xf32>
    %75 = vector.extract_strided_slice %0 {offsets = [8, 0], sizes = [1, 256], strides = [1, 1]} : vector<9x256xf32> to vector<1x256xf32>
    %76 = vector.broadcast %75 : vector<1x256xf32> to vector<8x256xf32>
    %77 = arith.mulf %74, %76 : vector<8x256xf32>
    %78 = tpu.concatenate %49, %53, %57, %61, %45, %65, %69, %73, %77 in 0 : vector<8x256xf32>, vector<8x256xf32>, vector<8x256xf32>, vector<8x256xf32>, vector<8x256xf32>, vector<8x256xf32>, vector<8x256xf32>, vector<8x256xf32>, vector<8x256xf32> -> vector<72x256xf32>
    %79 = arith.truncf %78 : vector<72x256xf32> to vector<72x256xbf16>
    %cst_19 = arith.constant dense<0.000000e+00> : vector<8x256xf32>
    %80 = tpu.matmul %6, %79, %cst_19 {dimension_numbers = #tpu.dot_dimension_numbers<[1], [0], [0], [1], [0, 0, 1, 1], [], []>} : vector<8x72xbf16>, vector<72x256xbf16>, vector<8x256xf32> -> vector<8x256xf32>
    %81 = arith.addf %80, %7 : vector<8x256xf32>
    %82 = tpu.concatenate %44, %81 in 0 : vector<8x256xf32>, vector<8x256xf32> -> vector<16x256xf32>
    %cst_20 = arith.constant 0.000000e+00 : f32
    %83 = vector.broadcast %cst_20 : f32 to vector<16x256xf32>
    %84 = arith.maximumf %82, %83 : vector<16x256xf32>
    %c0_21 = arith.constant 0 : index
    %c0_22 = arith.constant 0 : index
    %c0_23 = arith.constant 0 : index
    %85 = vector.load %arg2[%c0_21, %c0_22, %c0_23] : memref<1x16x256xf32, #tpu.memory_space<vmem>>, vector<1x16x256xf32>
    %86 = vector.shape_cast %85 : vector<1x16x256xf32> to vector<16x256xf32>
    %87 = arith.addf %84, %86 : vector<16x256xf32>
    %88 = arith.truncf %87 : vector<16x256xf32> to vector<16x256xbf16>
    %c0_24 = arith.constant 0 : index
    %c0_25 = arith.constant 0 : index
    %89 = vector.load %arg9[%c0_24, %c0_25] : memref<256x512xbf16, #tpu.memory_space<vmem>>, vector<256x512xbf16>
    %cst_26 = arith.constant dense<0.000000e+00> : vector<16x512xf32>
    %90 = tpu.matmul %88, %89, %cst_26 {dimension_numbers = #tpu.dot_dimension_numbers<[1], [0], [0], [1], [0, 0, 1, 1], [], []>} : vector<16x256xbf16>, vector<256x512xbf16>, vector<16x512xf32> -> vector<16x512xf32>
    %91 = vector.extract_strided_slice %90 {offsets = [0, 0], sizes = [16, 256], strides = [1, 1]} : vector<16x512xf32> to vector<16x256xf32>
    %92 = vector.extract_strided_slice %90 {offsets = [0, 256], sizes = [16, 256], strides = [1, 1]} : vector<16x512xf32> to vector<16x256xf32>
    %c12_i32 = arith.constant 12 : i32
    %93 = tpu.dynamic_rotate %92 by %c12_i32 dim 0 : vector<16x256xf32>, i32 -> vector<16x256xf32>
    %c4_i32 = arith.constant 4 : i32
    %94 = tpu.dynamic_rotate %92 by %c4_i32 dim 0 : vector<16x256xf32>, i32 -> vector<16x256xf32>
    %95 = vector.shape_cast %3 : vector<16x1xi1> to vector<16x1xi1>
    %96 = vector.broadcast %95 : vector<16x1xi1> to vector<16x256xi1>
    %97 = arith.select %96, %93, %94 : vector<16x256xi1>, vector<16x256xf32>
    %98 = vector.broadcast %1 : vector<16x1xf32> to vector<16x256xf32>
    %99 = arith.mulf %98, %97 : vector<16x256xf32>
    %100 = arith.subf %91, %99 : vector<16x256xf32>
    %cst_27 = arith.constant 3.906250e-03 : f32
    %101 = vector.broadcast %cst_27 : f32 to vector<16x256xf32>
    %102 = arith.mulf %100, %101 : vector<16x256xf32>
    %c0_28 = arith.constant 0 : index
    %c0_29 = arith.constant 0 : index
    %c0_30 = arith.constant 0 : index
    %103 = vector.load %arg12[%c0_28, %c0_29, %c0_30] : memref<1x16x256xf32, #tpu.memory_space<vmem>>, vector<1x16x256xf32>
    %104 = vector.shape_cast %103 : vector<1x16x256xf32> to vector<16x256xf32>
    %105 = vector.shape_cast %102 : vector<16x256xf32> to vector<1x16x256xf32>
    tpu.vector_store %arg12[%c0_28, %c0_29, %c0_30], %105 {strides = array<i32>} : memref<1x16x256xf32, #tpu.memory_space<vmem>>, vector<1x16x256xf32>,
    %c0_31 = arith.constant 0 : index
    %c0_32 = arith.constant 0 : index
    %106 = vector.load %arg6[%c0_31, %c0_32] : memref<8x72xbf16, #tpu.memory_space<vmem>>, vector<8x72xbf16>
    %c0_33 = arith.constant 0 : index
    %c0_34 = arith.constant 0 : index
    %107 = vector.load %arg7[%c0_33, %c0_34] : memref<8x256xf32, #tpu.memory_space<vmem>>, vector<8x256xf32>
    %108 = vector.extract_strided_slice %102 {offsets = [0, 0], sizes = [8, 256], strides = [1, 1]} : vector<16x256xf32> to vector<8x256xf32>
    %c17_i32_35 = arith.constant 17 : i32
    %109 = tpu.dynamic_rotate %108 by %c17_i32_35 dim 1 : vector<8x256xf32>, i32 -> vector<8x256xf32>
    %110 = vector.extract_strided_slice %0 {offsets = [0, 0], sizes = [1, 256], strides = [1, 1]} : vector<9x256xf32> to vector<1x256xf32>
    %111 = vector.broadcast %110 : vector<1x256xf32> to vector<8x256xf32>
    %112 = arith.mulf %109, %111 : vector<8x256xf32>
    %c16_i32_36 = arith.constant 16 : i32
    %113 = tpu.dynamic_rotate %108 by %c16_i32_36 dim 1 : vector<8x256xf32>, i32 -> vector<8x256xf32>
    %114 = vector.extract_strided_slice %0 {offsets = [1, 0], sizes = [1, 256], strides = [1, 1]} : vector<9x256xf32> to vector<1x256xf32>
    %115 = vector.broadcast %114 : vector<1x256xf32> to vector<8x256xf32>
    %116 = arith.mulf %113, %115 : vector<8x256xf32>
    %c15_i32_37 = arith.constant 15 : i32
    %117 = tpu.dynamic_rotate %108 by %c15_i32_37 dim 1 : vector<8x256xf32>, i32 -> vector<8x256xf32>
    %118 = vector.extract_strided_slice %0 {offsets = [2, 0], sizes = [1, 256], strides = [1, 1]} : vector<9x256xf32> to vector<1x256xf32>
    %119 = vector.broadcast %118 : vector<1x256xf32> to vector<8x256xf32>
    %120 = arith.mulf %117, %119 : vector<8x256xf32>
    %c1_i32_38 = arith.constant 1 : i32
    %121 = tpu.dynamic_rotate %108 by %c1_i32_38 dim 1 : vector<8x256xf32>, i32 -> vector<8x256xf32>
    %122 = vector.extract_strided_slice %0 {offsets = [3, 0], sizes = [1, 256], strides = [1, 1]} : vector<9x256xf32> to vector<1x256xf32>
    %123 = vector.broadcast %122 : vector<1x256xf32> to vector<8x256xf32>
    %124 = arith.mulf %121, %123 : vector<8x256xf32>
    %c255_i32_39 = arith.constant 255 : i32
    %125 = tpu.dynamic_rotate %108 by %c255_i32_39 dim 1 : vector<8x256xf32>, i32 -> vector<8x256xf32>
    %126 = vector.extract_strided_slice %0 {offsets = [5, 0], sizes = [1, 256], strides = [1, 1]} : vector<9x256xf32> to vector<1x256xf32>
    %127 = vector.broadcast %126 : vector<1x256xf32> to vector<8x256xf32>
    %128 = arith.mulf %125, %127 : vector<8x256xf32>
    %c241_i32_40 = arith.constant 241 : i32
    %129 = tpu.dynamic_rotate %108 by %c241_i32_40 dim 1 : vector<8x256xf32>, i32 -> vector<8x256xf32>
    %130 = vector.extract_strided_slice %0 {offsets = [6, 0], sizes = [1, 256], strides = [1, 1]} : vector<9x256xf32> to vector<1x256xf32>
    %131 = vector.broadcast %130 : vector<1x256xf32> to vector<8x256xf32>
    %132 = arith.mulf %129, %131 : vector<8x256xf32>
    %c240_i32_41 = arith.constant 240 : i32
    %133 = tpu.dynamic_rotate %108 by %c240_i32_41 dim 1 : vector<8x256xf32>, i32 -> vector<8x256xf32>
    %134 = vector.extract_strided_slice %0 {offsets = [7, 0], sizes = [1, 256], strides = [1, 1]} : vector<9x256xf32> to vector<1x256xf32>
    %135 = vector.broadcast %134 : vector<1x256xf32> to vector<8x256xf32>
    %136 = arith.mulf %133, %135 : vector<8x256xf32>
    %c239_i32_42 = arith.constant 239 : i32
    %137 = tpu.dynamic_rotate %108 by %c239_i32_42 dim 1 : vector<8x256xf32>, i32 -> vector<8x256xf32>
    %138 = vector.extract_strided_slice %0 {offsets = [8, 0], sizes = [1, 256], strides = [1, 1]} : vector<9x256xf32> to vector<1x256xf32>
    %139 = vector.broadcast %138 : vector<1x256xf32> to vector<8x256xf32>
    %140 = arith.mulf %137, %139 : vector<8x256xf32>
    %141 = tpu.concatenate %112, %116, %120, %124, %108, %128, %132, %136, %140 in 0 : vector<8x256xf32>, vector<8x256xf32>, vector<8x256xf32>, vector<8x256xf32>, vector<8x256xf32>, vector<8x256xf32>, vector<8x256xf32>, vector<8x256xf32>, vector<8x256xf32> -> vector<72x256xf32>
    %142 = arith.truncf %141 : vector<72x256xf32> to vector<72x256xbf16>
    %cst_43 = arith.constant dense<0.000000e+00> : vector<8x256xf32>
    %143 = tpu.matmul %106, %142, %cst_43 {dimension_numbers = #tpu.dot_dimension_numbers<[1], [0], [0], [1], [0, 0, 1, 1], [], []>} : vector<8x72xbf16>, vector<72x256xbf16>, vector<8x256xf32> -> vector<8x256xf32>
    %144 = arith.addf %143, %107 : vector<8x256xf32>
    %145 = vector.extract_strided_slice %102 {offsets = [8, 0], sizes = [8, 256], strides = [1, 1]} : vector<16x256xf32> to vector<8x256xf32>
    %c17_i32_44 = arith.constant 17 : i32
    %146 = tpu.dynamic_rotate %145 by %c17_i32_44 dim 1 : vector<8x256xf32>, i32 -> vector<8x256xf32>
    %147 = vector.extract_strided_slice %0 {offsets = [0, 0], sizes = [1, 256], strides = [1, 1]} : vector<9x256xf32> to vector<1x256xf32>
    %148 = vector.broadcast %147 : vector<1x256xf32> to vector<8x256xf32>
    %149 = arith.mulf %146, %148 : vector<8x256xf32>
    %c16_i32_45 = arith.constant 16 : i32
    %150 = tpu.dynamic_rotate %145 by %c16_i32_45 dim 1 : vector<8x256xf32>, i32 -> vector<8x256xf32>
    %151 = vector.extract_strided_slice %0 {offsets = [1, 0], sizes = [1, 256], strides = [1, 1]} : vector<9x256xf32> to vector<1x256xf32>
    %152 = vector.broadcast %151 : vector<1x256xf32> to vector<8x256xf32>
    %153 = arith.mulf %150, %152 : vector<8x256xf32>
    %c15_i32_46 = arith.constant 15 : i32
    %154 = tpu.dynamic_rotate %145 by %c15_i32_46 dim 1 : vector<8x256xf32>, i32 -> vector<8x256xf32>
    %155 = vector.extract_strided_slice %0 {offsets = [2, 0], sizes = [1, 256], strides = [1, 1]} : vector<9x256xf32> to vector<1x256xf32>
    %156 = vector.broadcast %155 : vector<1x256xf32> to vector<8x256xf32>
    %157 = arith.mulf %154, %156 : vector<8x256xf32>
    %c1_i32_47 = arith.constant 1 : i32
    %158 = tpu.dynamic_rotate %145 by %c1_i32_47 dim 1 : vector<8x256xf32>, i32 -> vector<8x256xf32>
    %159 = vector.extract_strided_slice %0 {offsets = [3, 0], sizes = [1, 256], strides = [1, 1]} : vector<9x256xf32> to vector<1x256xf32>
    %160 = vector.broadcast %159 : vector<1x256xf32> to vector<8x256xf32>
    %161 = arith.mulf %158, %160 : vector<8x256xf32>
    %c255_i32_48 = arith.constant 255 : i32
    %162 = tpu.dynamic_rotate %145 by %c255_i32_48 dim 1 : vector<8x256xf32>, i32 -> vector<8x256xf32>
    %163 = vector.extract_strided_slice %0 {offsets = [5, 0], sizes = [1, 256], strides = [1, 1]} : vector<9x256xf32> to vector<1x256xf32>
    %164 = vector.broadcast %163 : vector<1x256xf32> to vector<8x256xf32>
    %165 = arith.mulf %162, %164 : vector<8x256xf32>
    %c241_i32_49 = arith.constant 241 : i32
    %166 = tpu.dynamic_rotate %145 by %c241_i32_49 dim 1 : vector<8x256xf32>, i32 -> vector<8x256xf32>
    %167 = vector.extract_strided_slice %0 {offsets = [6, 0], sizes = [1, 256], strides = [1, 1]} : vector<9x256xf32> to vector<1x256xf32>
    %168 = vector.broadcast %167 : vector<1x256xf32> to vector<8x256xf32>
    %169 = arith.mulf %166, %168 : vector<8x256xf32>
    %c240_i32_50 = arith.constant 240 : i32
    %170 = tpu.dynamic_rotate %145 by %c240_i32_50 dim 1 : vector<8x256xf32>, i32 -> vector<8x256xf32>
    %171 = vector.extract_strided_slice %0 {offsets = [7, 0], sizes = [1, 256], strides = [1, 1]} : vector<9x256xf32> to vector<1x256xf32>
    %172 = vector.broadcast %171 : vector<1x256xf32> to vector<8x256xf32>
    %173 = arith.mulf %170, %172 : vector<8x256xf32>
    %c239_i32_51 = arith.constant 239 : i32
    %174 = tpu.dynamic_rotate %145 by %c239_i32_51 dim 1 : vector<8x256xf32>, i32 -> vector<8x256xf32>
    %175 = vector.extract_strided_slice %0 {offsets = [8, 0], sizes = [1, 256], strides = [1, 1]} : vector<9x256xf32> to vector<1x256xf32>
    %176 = vector.broadcast %175 : vector<1x256xf32> to vector<8x256xf32>
    %177 = arith.mulf %174, %176 : vector<8x256xf32>
    %178 = tpu.concatenate %149, %153, %157, %161, %145, %165, %169, %173, %177 in 0 : vector<8x256xf32>, vector<8x256xf32>, vector<8x256xf32>, vector<8x256xf32>, vector<8x256xf32>, vector<8x256xf32>, vector<8x256xf32>, vector<8x256xf32>, vector<8x256xf32> -> vector<72x256xf32>
    %179 = arith.truncf %178 : vector<72x256xf32> to vector<72x256xbf16>
    %cst_52 = arith.constant dense<0.000000e+00> : vector<8x256xf32>
    %180 = tpu.matmul %106, %179, %cst_52 {dimension_numbers = #tpu.dot_dimension_numbers<[1], [0], [0], [1], [0, 0, 1, 1], [], []>} : vector<8x72xbf16>, vector<72x256xbf16>, vector<8x256xf32> -> vector<8x256xf32>
    %181 = arith.addf %180, %107 : vector<8x256xf32>
    %182 = tpu.concatenate %144, %181 in 0 : vector<8x256xf32>, vector<8x256xf32> -> vector<16x256xf32>
    %cst_53 = arith.constant 0.000000e+00 : f32
    %183 = vector.broadcast %cst_53 : f32 to vector<16x256xf32>
    %184 = arith.maximumf %182, %183 : vector<16x256xf32>
    %c0_54 = arith.constant 0 : index
    %c0_55 = arith.constant 0 : index
    %c0_56 = arith.constant 0 : index
    %185 = vector.load %arg3[%c0_54, %c0_55, %c0_56] : memref<1x16x256xf32, #tpu.memory_space<vmem>>, vector<1x16x256xf32>
    %186 = vector.shape_cast %185 : vector<1x16x256xf32> to vector<16x256xf32>
    %187 = arith.addf %184, %186 : vector<16x256xf32>
    %188 = arith.truncf %187 : vector<16x256xf32> to vector<16x256xbf16>
    %c0_57 = arith.constant 0 : index
    %c0_58 = arith.constant 0 : index
    %189 = vector.load %arg9[%c0_57, %c0_58] : memref<256x512xbf16, #tpu.memory_space<vmem>>, vector<256x512xbf16>
    %cst_59 = arith.constant dense<0.000000e+00> : vector<16x512xf32>
    %190 = tpu.matmul %188, %189, %cst_59 {dimension_numbers = #tpu.dot_dimension_numbers<[1], [0], [0], [1], [0, 0, 1, 1], [], []>} : vector<16x256xbf16>, vector<256x512xbf16>, vector<16x512xf32> -> vector<16x512xf32>
    %191 = vector.extract_strided_slice %190 {offsets = [0, 0], sizes = [16, 256], strides = [1, 1]} : vector<16x512xf32> to vector<16x256xf32>
    %192 = vector.extract_strided_slice %190 {offsets = [0, 256], sizes = [16, 256], strides = [1, 1]} : vector<16x512xf32> to vector<16x256xf32>
    %c12_i32_60 = arith.constant 12 : i32
    %193 = tpu.dynamic_rotate %192 by %c12_i32_60 dim 0 : vector<16x256xf32>, i32 -> vector<16x256xf32>
    %c4_i32_61 = arith.constant 4 : i32
    %194 = tpu.dynamic_rotate %192 by %c4_i32_61 dim 0 : vector<16x256xf32>, i32 -> vector<16x256xf32>
    %195 = vector.shape_cast %3 : vector<16x1xi1> to vector<16x1xi1>
    %196 = vector.broadcast %195 : vector<16x1xi1> to vector<16x256xi1>
    %197 = arith.select %196, %193, %194 : vector<16x256xi1>, vector<16x256xf32>
    %198 = vector.broadcast %1 : vector<16x1xf32> to vector<16x256xf32>
    %199 = arith.mulf %198, %197 : vector<16x256xf32>
    %200 = arith.addf %191, %199 : vector<16x256xf32>
    %c0_62 = arith.constant 0 : index
    %c0_63 = arith.constant 0 : index
    %c0_64 = arith.constant 0 : index
    %201 = vector.load %arg11[%c0_62, %c0_63, %c0_64] : memref<1x16x256xf32, #tpu.memory_space<vmem>>, vector<1x16x256xf32>
    %202 = vector.shape_cast %201 : vector<1x16x256xf32> to vector<16x256xf32>
    %203 = vector.shape_cast %200 : vector<16x256xf32> to vector<1x16x256xf32>
    tpu.vector_store %arg11[%c0_62, %c0_63, %c0_64], %203 {strides = array<i32>} : memref<1x16x256xf32, #tpu.memory_space<vmem>>, vector<1x16x256xf32>,
    return
  }
  func.func @transform_0(%arg0: i32) -> (i32, i32, i32) {
    %c0_i32 = arith.constant 0 : i32
    %c0_i32_0 = arith.constant 0 : i32
    %c0_i32_1 = arith.constant 0 : i32
    return %arg0, %c0_i32, %c0_i32_0 : i32, i32, i32
  }
  func.func @transform_1(%arg0: i32) -> (i32, i32, i32) {
    %c0_i32 = arith.constant 0 : i32
    %c0_i32_0 = arith.constant 0 : i32
    %c0_i32_1 = arith.constant 0 : i32
    return %arg0, %c0_i32, %c0_i32_0 : i32, i32, i32
  }
  func.func @transform_2(%arg0: i32) -> (i32, i32, i32) {
    %c0_i32 = arith.constant 0 : i32
    %c0_i32_0 = arith.constant 0 : i32
    %c0_i32_1 = arith.constant 0 : i32
    return %arg0, %c0_i32, %c0_i32_0 : i32, i32, i32
  }
  func.func @transform_3(%arg0: i32) -> (i32, i32) {
    %c0_i32 = arith.constant 0 : i32
    %c0_i32_0 = arith.constant 0 : i32
    %c0_i32_1 = arith.constant 0 : i32
    return %c0_i32, %c0_i32_0 : i32, i32
  }
  func.func @transform_4(%arg0: i32) -> (i32, i32) {
    %c0_i32 = arith.constant 0 : i32
    %c0_i32_0 = arith.constant 0 : i32
    %c0_i32_1 = arith.constant 0 : i32
    return %c0_i32, %c0_i32_0 : i32, i32
  }
  func.func @transform_5(%arg0: i32) -> (i32, i32) {
    %c0_i32 = arith.constant 0 : i32
    %c0_i32_0 = arith.constant 0 : i32
    %c0_i32_1 = arith.constant 0 : i32
    return %c0_i32, %c0_i32_0 : i32, i32
  }
  func.func @transform_6(%arg0: i32) -> (i32, i32) {
    %c0_i32 = arith.constant 0 : i32
    %c0_i32_0 = arith.constant 0 : i32
    %c0_i32_1 = arith.constant 0 : i32
    return %c0_i32, %c0_i32_0 : i32, i32
  }
  func.func @transform_7(%arg0: i32) -> (i32, i32) {
    %c0_i32 = arith.constant 0 : i32
    %c0_i32_0 = arith.constant 0 : i32
    %c0_i32_1 = arith.constant 0 : i32
    return %c0_i32, %c0_i32_0 : i32, i32
  }
  func.func @transform_8(%arg0: i32) -> (i32, i32) {
    %c0_i32 = arith.constant 0 : i32
    %c0_i32_0 = arith.constant 0 : i32
    %c0_i32_1 = arith.constant 0 : i32
    return %c0_i32, %c0_i32_0 : i32, i32
  }
  func.func @transform_9(%arg0: i32) -> (i32, i32) {
    %c0_i32 = arith.constant 0 : i32
    %c0_i32_0 = arith.constant 0 : i32
    %c0_i32_1 = arith.constant 0 : i32
    return %c0_i32, %c0_i32_0 : i32, i32
  }
  func.func @transform_10(%arg0: i32) -> (i32, i32, i32) {
    %c0_i32 = arith.constant 0 : i32
    %c0_i32_0 = arith.constant 0 : i32
    %c0_i32_1 = arith.constant 0 : i32
    return %arg0, %c0_i32, %c0_i32_0 : i32, i32, i32
  }
  func.func @transform_11(%arg0: i32) -> (i32, i32, i32) {
    %c0_i32 = arith.constant 0 : i32
    %c0_i32_0 = arith.constant 0 : i32
    %c0_i32_1 = arith.constant 0 : i32
    return %arg0, %c0_i32, %c0_i32_0 : i32, i32, i32
  }
}

</mosaic_0001>

<bundles_post_ra>
// kernel: tpu_custom_call.1
= control target key start
LH: loop header
LB: loop body
LE: loop exit
PB: predicated region body
PF: predicated region fallthrough
CT: control target
= control target key end

     0   :  { %s4226_s0 = inlined_call_operand.hbm [shape: f32[2,16,256], index: 0, kind: input, shape index: {}]   ;;  %s4227_s1 = inlined_call_operand.hbm [shape: f32[2,16,256], index: 1, kind: input, shape index: {}]   ;;  %s4228_s2 = inlined_call_operand.hbm [shape: f32[2,16,256], index: 2, kind: input, shape index: {}]   ;;  %s4229_s3 = inlined_call_operand.vmem [shape: bf16[8,72], index: 3, kind: input, shape index: {}]   ;;  %s4230_s4 = inlined_call_operand.vmem [shape: f32[8,256], index: 4, kind: input, shape index: {}]   ;;  %s4231_s5 = inlined_call_operand.vmem [shape: bf16[8,72], index: 5, kind: input, shape index: {}]   ;;  %s4232_s6 = inlined_call_operand.hbm [shape: f32[8,256], index: 6, kind: input, shape index: {}]   ;;  %s4233_s7 = inlined_call_operand.hbm [shape: f32[9,256], index: 7, kind: input, shape index: {}]   ;;  %s4234_s8 = inlined_call_operand.hbm [shape: bf16[256,512], index: 8, kind: input, shape index: {}]   ;;  %s4235_s9 = inlined_call_operand.vmem [shape: f32[16,1], index: 9, kind: input, shape index: {}]   ;;  %s4236_s10 = inlined_call_operand.hbm [shape: f32[2,16,256], index: 10, kind: output, shape index: {0}]   ;;  %s4237_s11 = inlined_call_operand.hbm [shape: f32[2,16,256], index: 11, kind: output, shape index: {1}]  }
   0x1   :  { %4302 = sst [smem:[#allocation70_spill]] %s4227_s1 }
   0x2   :  { %4303 = sst [smem:[#allocation71_spill]] %s4232_s6 }
   0x3   :  { %4304 = sst [smem:[#allocation72_spill]] %s4233_s7 }
   0x4   :  { %4305 = sst [smem:[#allocation73_spill]] %s4236_s10 }
   0x5   :  { %4306 = sst [smem:[#allocation74_spill]] %s4237_s11 }
   0x6   :  { %17 = vsyncpa [#allocation3], 0 }
   0x7   :  { %19 = vsyncpa [#allocation3 + $0x1], 0 }
   0x8   :  { %20 = vsyncpa [#allocation6], 0 }
   0x9   :  { %22 = vsyncpa [#allocation6 + $0x1], 0 }
   0xa   :  { %23 = vsyncpa [#allocation9], 0 }
   0xb   :  { %24 = vsyncpa [#allocation12], 0 }
   0xc   :  { %25 = vsyncpa [#allocation4], 0 }
   0xd   :  { %27 = vsyncpa [#allocation4 + $0x1], 0 }
   0xe   :  { %28 = vsyncpa [#allocation15], 0 }
   0xf   :  { %30 = vsyncpa [#allocation15 + $0x1], 0  ;;  %s3102_s17 = smov 0   ;;  %s3104_s18 = smov 0  }
  0x10   :  { %s3106_s19 = smov 0   ;;  %s3108_s20 = smov 0  }
  0x11 LB: > { %4307 = sst [smem:[#allocation22_spill]] %s3008_s17  ;;  %s3123_s21 = sadd.s32 4294967295, %s3020_s20   ;;  %s3020_s20 = sphi %s3108_s20, %s4430_s20   ;;  %s3016_s19 = sphi %s3106_s19, %s4434_s19   ;;  %s3012_s18 = sphi %s3104_s18, %s4433_s18   ;;  %s3008_s17 = sphi %s3102_s17, %s4432_s17  }
  0x12   : > { %4308 = sst [smem:[#allocation23_spill]] %s3020_s20  ;;  %s2375_s22 = sadd.s32 4294967294, %s3020_s20  }
  0x13   : > { %s3127_s23 = sadd.s32 1, %s3020_s20   ;;  %s43_s24 = sadd.s32 1, %s3016_s19 }
  0x14   : > { %4309 = sst [smem:[#allocation24_spill]] %s3127_s23  ;;  %s40_s25 = ssub.s32 %s3020_s20, %s3127_s23 }
  0x15   : > { %p50_p0 = scmp.ne.s32.totalorder %s3016_s19, %s3012_s18  ;;  %p41_p1 = scmp.eq.s32.totalorder %s40_s25, 0 }
  0x16   : > { %p51_p2 = scmp.eq.s32.totalorder %s3020_s20, 0  ;;  %p56_p3 = scmp.ne.s32.totalorder %s3012_s18, %s3008_s17 }
  0x17   : > { %p4238_p4 = scmp.eq.s32.totalorder %s3123_s21, 0  ;;  %p279_p7 = scmp.eq.s32.totalorder %s3123_s21, 1 }
  0x18   : > { %s3139_s26 = scalar_select %p41_p1, %s3016_s19, %s43_s24  }
  0x19   : > { %p3141_p5 = por %p51_p2, %p50_p0  ;;  %p3147_p6 = por %p4238_p4, %p56_p3 }
  0x1a   : > { %4310 = sst [smem:[#allocation25_spill]] %s3139_s26  ;;  %p285_p8 = scmp.eq.s32.totalorder %s2375_s22, 1 }
  0x1b   : > { %s4312_s28 = scalar_select %p3147_p6, 1, 0 }
  0x1c   : > { %p2376_p9 = scmp.ge.s32.totalorder %s3020_s20, 1  ;;  %p318_p10 = scmp.lt.s32.totalorder %s3020_s20, 3 }
  0x1d   : > { %p3154_p11 = por %p279_p7, %p50_p0  ;;  %p3158_p12 = por %p285_p8, %p56_p3 }
  0x1e   : > { %p3162_p13 = pnand %p2376_p9, %p318_p10  ;;  %s3022_s13 = smov [#allocation8]  }
  0x1f   : > { %s4313_s29 = scalar_select %p3154_p11, 1, 0 }
  0x20   : > { %s4314_s30 = scalar_select %p3158_p12, 1, 0 }
  0x21   : > { %s4316_s12 = scalar_select %p3162_p13, 1, 0 }
  0x22   : > { %4315 = sst [smem:[#allocation26_spill]] %s4314_s30  ;;  %p2572_p2 = pneg %p3162_p13 }
  0x23   : > { %s340_s14 = sshll.u32 %s3022_s13, 4  ;;  %p2602_p3 = scmp.lt.s32.totalorder %s3020_s20, 2  ;;  %s341_s14 = int_to_ptr.vmem [resolvable:$true] %s340_s14 }
  0x24   : > { %p3171_p0 = pnand %p2572_p2, %p4238_p4  ;;  %s4239_s16 = sand.u32 1, %s3016_s19  }
  0x25   : > { %s3179_s22 = sshll.u32 %s4239_s16, 5  ;;  %s2763_s24 = scalar_lea.vmem %s341_s14, 256 }
  0x26   : > { %s4317_s15 = scalar_select %p3171_p0, 1, 0 }
  0x27   : > { %p4246_p7 = pneg %p3171_p0  ;;  %p2764_p8 = scmp.ne.s32.totalorder %s341_s14, %s2763_s24 }
  0x28   : > { %p2771_p1 = scmp.lt.s32.totalorder %s341_s14, %s341_s14  ;;  %p2772_p2 = scmp.lt.s32.totalorder %s2763_s24, %s2763_s24 }
  0x29   : > { %p2766_p9 = pnand %p2764_p8, %p4246_p7 }
  0x2a   : > { %p2773_p4 = por %p2772_p2, %p2771_p1 }
  0x2b   : > { %p2767_p10 = pneg %p2766_p9 }
  0x2d   : > { %p2774_p12 = pnand %p2773_p4, %p2767_p10 }
  0x2f   : > { %2777 = shalt.err (!%p2774_p12)
}
  0x30   : > { %s4318_s6 = sld [smem:[#allocation71_spill]]  ;;  %s3192_s16 = sshll.u32 %s3020_s20, 9 }
  0x31   : > { %p3198_p8 = pnand %p2602_p3, %p3141_p5  ;;  %s401_s26 = sand.u32 1, %s3020_s20  }
  0x32   : > { %s4320_s1 = sld [smem:[#allocation70_spill]]  ;;  %s3212_s27 = scalar_lea.sflag [#allocation6], %s401_s26 }
  0x33   : > { %p3218_p5 = pneg %p3198_p8 }
  0x36   : > { %2575 = dma.hbm_to_vmem [thread:$0]  (!%p3171_p0), %s4318_s6, 256, %s341_s14, [#allocation9]  }
  0x37   : > { %s405_s14 = scalar_lea.vmem [#allocation5], %s3179_s22 }
  0x38   : > { %s3207_s25 = scalar_lea.hbm %s4320_s1, %s3192_s16  ;;  %s412_s13 = sshll.u32 %s405_s14, 4  ;;  %s3210_s13 = int_to_ptr.vmem [resolvable:$true] %s412_s13 }
  0x39   : > { %s2778_s6 = scalar_lea.hbm %s3207_s25, 512  ;;  %s2783_s20 = scalar_lea.hbm %s4320_s1, 1024 }
  0x3a   : > { %p2779_p4 = scmp.ne.s32.totalorder %s3207_s25, %s2778_s6  ;;  %p2784_p3 = scmp.lt.s32.totalorder %s3207_s25, %s4320_s1 }
  0x3b   : > { %p2785_p9 = scmp.lt.s32.totalorder %s2783_s20, %s2778_s6 }
  0x3c   : > { %p2781_p12 = pnand %p3218_p5, %p2779_p4 }
  0x3d   : > { %p2786_p10 = por %p2785_p9, %p2784_p3 }
  0x3e   : > { %p2782_p1 = pneg %p2781_p12 }
  0x40   : > { %p2787_p2 = pnand %p2786_p10, %p2782_p1 }
  0x42   : > { %2790 = shalt.err (!%p2787_p2)
}
  0x43   : > { %s2791_s26 = scalar_lea.vmem %s3210_s13, 512  ;;  %s3023_s11 = smov [#allocation5]  }
  0x44   : > { %p2792_p7 = scmp.ne.s32.totalorder %s3210_s13, %s2791_s26  ;;  %s2796_s23 = sshll.u32 %s3023_s11, 4  ;;  %s2797_s23 = int_to_ptr.vmem [resolvable:$false] %s2796_s23 }
  0x45   : > { %s2798_s30 = scalar_lea.vmem %s2797_s23, 1024  ;;  %p2799_p11 = scmp.lt.s32.totalorder %s3210_s13, %s2797_s23 }
  0x46   : > { %p2794_p4 = pnand %p2792_p7, %p3218_p5  ;;  %p2800_p6 = scmp.lt.s32.totalorder %s2798_s30, %s2791_s26 }
  0x48   : > { %p2795_p12 = pneg %p2794_p4  ;;  %p2801_p13 = por %p2800_p6, %p2799_p11 }
  0x4a   : > { %p2802_p0 = pnand %p2801_p13, %p2795_p12 }
  0x4c   : > { %2805 = shalt.err (!%p2802_p0)
}
  0x4d   : > { %s4253_s6 = smov 256   ;;  %s4255_s10 = smov 16  }
  0x4e   : > { %2588 = dma.hbm_to_vmem [thread:$0]  (!%p3198_p8), %s3207_s25, 512, %s3210_s13, %s3212_s27, %s4253_s6, %s4253_s6, %s4255_s10  }
  0x4f   : > { %s3026_s11 = smov [#allocation10]   ;;  %s3027_s14 = smov [#allocation11]  }
  0x50   : > { %s350_s20 = sshll.u32 %s3026_s11, 4  ;;  %s363_s26 = sshll.u32 %s3027_s14, 4  ;;  %s351_s20 = int_to_ptr.vmem [resolvable:$true] %s350_s20  ;;  %s364_s26 = int_to_ptr.vmem [resolvable:$true] %s363_s26 }
  0x51   : > { %s2817_s23 = scalar_lea.vmem %s351_s20, 512  ;;  %p4322_p11 = scmp.ne.s32.totalorder %s4317_s15, 0 }
  0x52   : > { %p2818_p6 = scmp.ne.s32.totalorder %s351_s20, %s2817_s23  ;;  %p2825_p1 = scmp.lt.s32.totalorder %s351_s20, %s351_s20 }
  0x53   : > { %p4323_p13 = pneg %p4322_p11  ;;  %p2826_p3 = scmp.lt.s32.totalorder %s2817_s23, %s2817_s23 }
  0x55   : > { %p2820_p0 = pnand %p2818_p6, %p4323_p13  ;;  %p2827_p9 = por %p2826_p3, %p2825_p1 }
  0x57   : > { %p2821_p7 = pneg %p2820_p0 }
  0x59   : > { %p2828_p10 = pnand %p2827_p9, %p2821_p7 }
  0x5b   : > { %2831 = shalt.err (!%p2828_p10)
}
  0x5c   : > { %s4324_s7 = sld [smem:[#allocation72_spill]]  ;;  %s2843_s30 = scalar_lea.vmem %s364_s26, 8192 }
  0x5d   : > { %p2844_p2 = scmp.ne.s32.totalorder %s364_s26, %s2843_s30  ;;  %p4325_p4 = pmov %p4323_p13 }
  0x5e   : > { %p2851_p13 = scmp.lt.s32.totalorder %s364_s26, %s364_s26  ;;  %p2852_p0 = scmp.lt.s32.totalorder %s2843_s30, %s2843_s30 }
  0x5f   : > { %p2846_p12 = pnand %p2844_p2, %p4325_p4 }
  0x60   : > { %p2853_p7 = por %p2852_p0, %p2851_p13 }
  0x61   : > { %p2847_p6 = pneg %p2846_p12 }
  0x62   : > { %2578 = dma.hbm_to_vmem [thread:$0]  (!%p4322_p11), %s4324_s7, 512, %s351_s20, [#allocation9], %s4253_s6, %s4253_s6, %s4255_s10  }
  0x63   : > { %p2854_p1 = pnand %p2853_p7, %p2847_p6 }
  0x65   : > { %2857 = shalt.err (!%p2854_p1)
}
  0x66   : > { %2581 = dma.hbm_to_vmem [thread:$0]  (!%p4322_p11), %s4234_s8, 8192, %s364_s26, [#allocation12], %s4253_s6, %s4253_s6, %s4255_s10  }
  0x67   : > { %s3270_s25 = scalar_lea.hbm %s4226_s0, %s3192_s16  ;;  %s384_s15 = scalar_lea.vmem [#allocation2], %s3179_s22 }
  0x68   : > { %s391_s13 = sshll.u32 %s384_s15, 4  ;;  %s3279_s14 = scalar_lea.hbm %s4228_s2, %s3192_s16  ;;  %s3273_s13 = int_to_ptr.vmem [resolvable:$true] %s391_s13 }
  0x69   : > { %s4326_s1 = sand.u32 1, %s3016_s19   ;;  %s2858_s26 = scalar_lea.hbm %s3270_s25, 512 }
  0x6a   : > { %s381_s7 = scalar_lea.sflag [#allocation3], %s4326_s1  ;;  %p2859_p11 = scmp.ne.s32.totalorder %s3270_s25, %s2858_s26 }
  0x6b   : > { %s2863_s6 = scalar_lea.hbm %s4226_s0, 1024  ;;  %p2864_p10 = scmp.lt.s32.totalorder %s3270_s25, %s4226_s0 }
  0x6c   : > { %p2861_p3 = pnand %p2859_p11, %p3218_p5  ;;  %p2865_p2 = scmp.lt.s32.totalorder %s2863_s6, %s2858_s26 }
  0x6e   : > { %p2862_p9 = pneg %p2861_p3  ;;  %p2866_p4 = por %p2865_p2, %p2864_p10 }
  0x70   : > { %p2867_p12 = pnand %p2866_p4, %p2862_p9 }
  0x72   : > { %2870 = shalt.err (!%p2867_p12)
}
  0x73   : > { %s2871_s1 = scalar_lea.vmem %s3273_s13, 512  ;;  %s3028_s16 = smov [#allocation2]  }
  0x74   : > { %p2872_p6 = scmp.ne.s32.totalorder %s3273_s13, %s2871_s1  ;;  %s2876_s30 = sshll.u32 %s3028_s16, 4  ;;  %s2877_s30 = int_to_ptr.vmem [resolvable:$false] %s2876_s30 }
  0x75   : > { %s2878_s11 = scalar_lea.vmem %s2877_s30, 1024  ;;  %p2879_p7 = scmp.lt.s32.totalorder %s3273_s13, %s2877_s30 }
  0x76   : > { %p2874_p13 = pnand %p2872_p6, %p3218_p5  ;;  %p2880_p1 = scmp.lt.s32.totalorder %s2878_s11, %s2871_s1 }
  0x78   : > { %p2875_p0 = pneg %p2874_p13  ;;  %p2881_p11 = por %p2880_p1, %p2879_p7 }
  0x7a   : > { %p2882_p3 = pnand %p2881_p11, %p2875_p0 }
  0x7c   : > { %2885 = shalt.err (!%p2882_p3)
}
  0x7d   : > { %s4327_s6 = smov 16   ;;  %s4328_s10 = smov 256  }
  0x7e   : > { %2585 = dma.hbm_to_vmem [thread:$0]  (!%p3198_p8), %s3270_s25, 512, %s3273_s13, %s381_s7, %s4328_s10, %s4328_s10, %s4327_s6  }
  0x7f   : > { %s426_s26 = scalar_lea.vmem [#allocation7], %s3179_s22  ;;  %s2886_s23 = scalar_lea.hbm %s3279_s14, 512 }
  0x80   : > { %s433_s20 = sshll.u32 %s426_s26, 4  ;;  %p2887_p9 = scmp.ne.s32.totalorder %s3279_s14, %s2886_s23  ;;  %s434_s20 = int_to_ptr.vmem [resolvable:$true] %s433_s20 }
  0x81   : > { %s2891_s16 = scalar_lea.hbm %s4228_s2, 1024  ;;  %p2892_p4 = scmp.lt.s32.totalorder %s3279_s14, %s4228_s2 }
  0x82   : > { %p2889_p10 = pnand %p2887_p9, %p3218_p5  ;;  %p2893_p12 = scmp.lt.s32.totalorder %s2891_s16, %s2886_s23 }
  0x84   : > { %p2890_p2 = pneg %p2889_p10  ;;  %p2894_p6 = por %p2893_p12, %p2892_p4 }
  0x86   : > { %p2895_p13 = pnand %p2894_p6, %p2890_p2 }
  0x88   : > { %2898 = shalt.err (!%p2895_p13)
}
  0x89   : > { %s2899_s7 = scalar_lea.vmem %s434_s20, 512  ;;  %s3029_s22 = smov [#allocation7]  }
  0x8a   : > { %p2900_p0 = scmp.ne.s32.totalorder %s434_s20, %s2899_s7  ;;  %s2904_s25 = sshll.u32 %s3029_s22, 4  ;;  %s2905_s25 = int_to_ptr.vmem [resolvable:$false] %s2904_s25 }
  0x8b   : > { %s2906_s13 = scalar_lea.vmem %s2905_s25, 1024  ;;  %p2907_p11 = scmp.lt.s32.totalorder %s434_s20, %s2905_s25 }
  0x8c   : > { %p2902_p7 = pnand %p2900_p0, %p3218_p5  ;;  %p2908_p3 = scmp.lt.s32.totalorder %s2906_s13, %s2899_s7 }
  0x8e   : > { %p2903_p1 = pneg %p2902_p7  ;;  %p2909_p9 = por %p2908_p3, %p2907_p11 }
  0x90   : > { %p2910_p10 = pnand %p2909_p9, %p2903_p1 }
  0x92   : > { %2913 = shalt.err (!%p2910_p10)
}
  0x93   : > { %2591 = dma.hbm_to_vmem [thread:$0]  (!%p3198_p8), %s3279_s14, 512, %s434_s20, %s3212_s27, %s4328_s10, %s4328_s10, %s4327_s6  }
  0x94   : > { %p4329_p5 = scmp.ne.s32.totalorder %s4316_s12, 0 }
  0x96   : > { %445 = sbr.rel (%p4329_p5) target bundleno = 1375 (0x55f), region = 60 }
  0x9b   : > { %s3330_s17 = sand.u32 1, %s3012_s18   ;;  %p4330_p2 = scmp.ne.s32.totalorder %s4312_s28, 0 }
  0x9c   : > { %s3333_s26 = sshll.u32 %s3330_s17, 5  ;;  %s448_s23 = scalar_lea.sflag [#allocation3], %s3330_s17 }
  0x9d   : > { %s451_s24 = scalar_lea.vmem [#allocation2], %s3333_s26 }
  0x9e   : > { %2983 = dma.done.wait (%p4330_p2), %s448_s23, 512  }
  0x9f   : > { %2985 = vsyncadd (%p4330_p2), %s448_s23, 4294966784  ;;  %s456_s12 = sand.u32 1, %s3123_s21   ;;  %s3343_s14 = scalar_lea.vmem [#allocation5], %s3333_s26 }
  0xa0   : > { %s457_s27 = scalar_lea.sflag [#allocation6], %s456_s12 }
  0xa1   : > { %2987 = dma.done.wait (%p4330_p2), %s457_s27, 1024  }
  0xa2   : > { %2989 = vsyncadd (%p4330_p2), %s457_s27, 4294966272  ;;  %s3350_s6 = scalar_lea.vmem [#allocation7], %s3333_s26  ;;  %p4331_p8 = scmp.eq.s32.totalorder %s3123_s21, 0 }
  0xa4   : > { %2991 = dma.done.wait (%p4331_p8), [#allocation9], 768   ;;  %p4332_p4 = pmov %p4331_p8 }
  0xa6   : > { %2993 = vsyncadd (%p4332_p4), [#allocation9], 4294966528  ;;  %p4333_p12 = pmov %p4332_p4 }
  0xa7   : > { %p4334_p6 = pmov %p4332_p4 }
  0xa8   : > { %2995 = dma.done.wait (%p4333_p12), [#allocation12], 8192  }
  0xa9   : > { %2997 = vsyncadd (%p4334_p6), [#allocation12], 4294959104  ;;  %v3360_v0 = vld [vmem:[%s451_s24 + $0x10] sm:$0xff]  ;;  %v3362_v1 = vld [vmem:[%s451_s24] sm:$0xff]  ;;  %s3030_s28 = smov 111   ;;  %s3031_s10 = smov 113   ;;  %v555_v5 = vlaneseq }
  0xaa   : > { %807 = vrot.lane.b32.xlu1 %v3360_v0, %s3030_s28  ;;  %672 = vrot.lane.b32.xlu0 %v3362_v1, %s3030_s28  ;;  %v3368_v2 = vld [vmem:[%s451_s24 + $0x18] sm:$0xff]  ;;  %v3370_v3 = vld [vmem:[%s451_s24 + $0x8] sm:$0xff]  ;;  %s3032_s20 = smov 112   ;;  %s3033_s15 = smov 127   ;;  %v4257_v4 = vmov 0   ;;  %v3457_v22 = vld [vmem:[#allocation10] sm:$0xff] }
  0xab   : > { %s3034_s1 = smov 15   ;;  %s3035_s16 = smov 1   ;;  %742 = vmatprep.mubr.bf16.mxu0 %v4257_v4  ;;  %863 = vmatprep.mubr.bf16.mxu1 %v4257_v4  ;;  %v3436_v6 = vand.u32 127, %v555_v5  ;;  %v3438_v9 = vshrl.u32 %v555_v5, 7  ;;  %v3441_v10 = vld [vmem:[#allocation10 + $0x10] ss:$0 sm:$0xff] }
  0xac   : > { %s3036_s30 = smov 17   ;;  %2655 = vset.pattern.permute.xlu1 %v4257_v4  ;;  %2654 = vset.pattern.permute.xlu0 %v4257_v4  ;;  %s3038_s11 = smov 16   ;;  %v3443_v11 = vld [vmem:[#allocation10 + $0x18] ss:$0 sm:$0xff]  ;;  %v3462_v25 = vld [vmem:[#allocation10 + $0x8] sm:$0xff]  ;;  %vm703_vm2 = vcmask 1043456  }
  0xad   : > { %vm676_vm0 = vcmp.lt.s32.totalorder %v3436_v6, 111  ;;  %v647_v14 = vsub.s32 6, %v3438_v9  ;;  %v664_v15 = vsub.s32 7, %v3438_v9  ;;  %vm642_vm1 = vcmp.lt.s32.totalorder %v3436_v6, 113  ;;  %v3747_v4 = vld [vmem:[#allocation11 + $0x1a8] ss:$16 sps:$4 sm:$0xff]  }
  0xae   : > { %809 = vrot.lane.b32.xlu1 %v3368_v2, %s3030_s28  ;;  %674 = vrot.lane.b32.xlu0 %v3370_v3, %s3030_s28  ;;  %vm659_vm3 = vcmp.lt.s32.totalorder %v3436_v6, 112  ;;  %v630_v52 = vsub.s32 5, %v3438_v9  ;;  %vm625_vm4 = vcmp.lt.s32.totalorder %v3436_v6, 127  ;;  %vm591_vm5 = vcmp.lt.s32.totalorder %v3436_v6, 15  ;;  %4359 = vst [vmem:[#allocation51_spill] sm:$0xff] %v3747_v4  ;;  %s2169_s25 = scalar_lea.sflag [#allocation15], %s3330_s17 }
  0xaf   : > { %v3465_v32 = vrot.slane %v3457_v22, %v647_v14  ;;  %v3469_v33 = vrot.slane %v3457_v22, %v664_v15  ;;  %v3472_v34 = vrot.slane %v3462_v25, %v647_v14  ;;  %v3479_v37 = vrot.slane %v3462_v25, %v664_v15  ;;  %p4423_p0 = scmp.ne.s32.totalorder %s4313_s29, 0  ;;  %s3039_s23 = smov [#allocation14]  }
  0xb0   : > { %v3504_v59 = vrot.slane %v3457_v22, %v630_v52  ;;  %v3507_v60 = vrot.slane %v3462_v25, %v630_v52  ;;  %vm608_vm6 = vcmp.lt.s32.totalorder %v3436_v6, 1  ;;  %vm557_vm7 = vcmp.lt.s32.totalorder %v3436_v6, 17  ;;  %s2918_s24 = sshll.u32 %s3039_s23, 4  ;;  %s2919_s24 = int_to_ptr.vmem [resolvable:$false] %s2918_s24 }
  0xb1   : > { %vm574_vm8 = vcmp.lt.s32.totalorder %v3436_v6, 16  ;;  %vm699_vm9 = vcmask 588800   ;;  %vm1362_vm12 = vcmp.lt.s32.totalorder %v3438_v9, 4  ;;  %s2920_s12 = scalar_lea.vmem %s2919_s24, 1024 }
  0xb2   : > { %640 = vrot.lane.b32.xlu1 %v3370_v3, %s3031_s10  ;;  %638 = vrot.lane.b32.xlu0 %v3362_v1, %s3031_s10 }
  0xb6   : > { %657 = vrot.lane.b32.xlu1 %v3370_v3, %s3032_s20  ;;  %655 = vrot.lane.b32.xlu0 %v3362_v1, %s3032_s20 }
  0xba   : > { %793 = vrot.lane.b32.xlu1 %v3368_v2, %s3031_s10  ;;  %791 = vrot.lane.b32.xlu0 %v3360_v0, %s3031_s10 }
  0xbe   : > { %801 = vrot.lane.b32.xlu1 %v3368_v2, %s3032_s20  ;;  %799 = vrot.lane.b32.xlu0 %v3360_v0, %s3032_s20 }
  0xc2   : > { %623 = vrot.lane.b32.xlu1 %v3370_v3, %s3033_s15  ;;  %621 = vrot.lane.b32.xlu0 %v3362_v1, %s3033_s15 }
  0xc6   : > { %785 = vrot.lane.b32.xlu1 %v3368_v2, %s3033_s15  ;;  %783 = vrot.lane.b32.xlu0 %v3360_v0, %s3033_s15 }
  0xca   : > { %589 = vrot.lane.b32.xlu1 %v3370_v3, %s3034_s1  ;;  %587 = vrot.lane.b32.xlu0 %v3362_v1, %s3034_s1 }
  0xce   : > { %606 = vrot.lane.b32.xlu1 %v3370_v3, %s3035_s16  ;;  %604 = vrot.lane.b32.xlu0 %v3362_v1, %s3035_s16 }
  0xd2   : > { %769 = vrot.lane.b32.xlu1 %v3368_v2, %s3034_s1  ;;  %767 = vrot.lane.b32.xlu0 %v3360_v0, %s3034_s1 }
  0xd6   : > { %777 = vrot.lane.b32.xlu1 %v3368_v2, %s3035_s16  ;;  %775 = vrot.lane.b32.xlu0 %v3360_v0, %s3035_s16 }
  0xda   : > { %553 = vrot.lane.b32.xlu1 %v3370_v3, %s3036_s30  ;;  %551 = vrot.lane.b32.xlu0 %v3362_v1, %s3036_s30 }
  0xde   : > { %572 = vrot.lane.b32.xlu1 %v3370_v3, %s3038_s11  ;;  %570 = vrot.lane.b32.xlu0 %v3362_v1, %s3038_s11 }
  0xe2   : > { %753 = vrot.lane.b32.xlu1 %v3368_v2, %s3036_s30  ;;  %751 = vrot.lane.b32.xlu0 %v3360_v0, %s3036_s30 }
  0xe6   : > { %761 = vrot.lane.b32.xlu1 %v3368_v2, %s3038_s11  ;;  %759 = vrot.lane.b32.xlu0 %v3360_v0, %s3038_s11 }
 0x11c   : > { %v808_v7 = vpop.permute.xlu1 %807  ;;  %v673_v8 = vpop.permute.xlu0 %672 }
 0x120   : > { %v810_v12 = vpop.permute.xlu1 %809  ;;  %v675_v13 = vpop.permute.xlu0 %674 }
 0x121   : > { %v811_v16 = vsel %vm676_vm0, %v808_v7, %v810_v12  ;;  %v812_v17 = vsel %vm676_vm0, %v810_v12, %v808_v7  ;;  %v677_v18 = vsel %vm676_vm0, %v673_v8, %v675_v13  ;;  %v678_v19 = vsel %vm676_vm0, %v675_v13, %v673_v8 }
 0x122   : > { %v813_v20 = vmul.f32 %v3441_v10, %v811_v16  ;;  %v687_v21 = vmul.f32 %v3441_v10, %v677_v18  ;;  %v688_v23 = vmul.f32 %v3443_v11, %v678_v19  ;;  %v814_v24 = vmul.f32 %v3443_v11, %v812_v17 }
 0x124   : > { %v641_v26 = vpop.permute.xlu1 %640  ;;  %v639_v27 = vpop.permute.xlu0 %638  ;;  %v698_v28 = vpack.c.bf16 %v688_v23, %v688_v23  ;;  %v824_v29 = vpack.c.bf16 %v814_v24, %v814_v24  ;;  %v697_v30 = vpack.c.bf16 %v687_v21, %v687_v21  ;;  %v823_v31 = vpack.c.bf16 %v813_v20, %v813_v20 }
 0x125   : > { %v643_v38 = vsel %vm642_vm1, %v639_v27, %v641_v26  ;;  %v644_v39 = vsel %vm642_vm1, %v641_v26, %v639_v27  ;;  %v596_v26 = vsub.s32 2, %v3438_v9 }
 0x126   : > { %2401 = vmatprep.subr.msk.bf16.mxu0 %vm703_vm2, %v698_v28  ;;  %2403 = vmatprep.subr.msk.bf16.mxu1 %vm703_vm2, %v824_v29  ;;  %v705_v35 = vsel %vm703_vm2, %v697_v30, 0  ;;  %v826_v36 = vsel %vm703_vm2, %v823_v31, 0  ;;  %v653_v44 = vmul.f32 %v3465_v32, %v643_v38  ;;  %v654_v45 = vmul.f32 %v3472_v34, %v644_v39 }
 0x127   : > { %717 = vmatpush1.bf16.msra.mxu0 %v705_v35  ;;  %838 = vmatpush1.bf16.msra.mxu1 %v826_v36  ;;  %v613_v29 = vsub.s32 3, %v3438_v9  ;;  %v3533_v35 = vrot.slane %v3457_v22, %v596_v26  ;;  %v3536_v36 = vrot.slane %v3462_v25, %v596_v26 }
 0x128   : > { %v658_v40 = vpop.permute.xlu1 %657  ;;  %v656_v41 = vpop.permute.xlu0 %655 }
 0x129   : > { %v660_v42 = vsel %vm659_vm3, %v656_v41, %v658_v40  ;;  %v661_v43 = vsel %vm659_vm3, %v658_v40, %v656_v41  ;;  %v3540_v38 = vrot.slane %v3457_v22, %v613_v29  ;;  %v3543_v39 = vrot.slane %v3462_v25, %v613_v29 }
 0x12a   : > { %v670_v46 = vmul.f32 %v3469_v33, %v660_v42  ;;  %v671_v47 = vmul.f32 %v3479_v37, %v661_v43 }
 0x12c   : > { %v794_v48 = vpop.permute.xlu1 %793  ;;  %v792_v49 = vpop.permute.xlu0 %791  ;;  %v696_v50 = vpack.c.bf16 %v671_v47, %v654_v45  ;;  %v695_v51 = vpack.c.bf16 %v670_v46, %v653_v44 }
 0x12d   : > { %v795_v53 = vsel %vm642_vm1, %v792_v49, %v794_v48  ;;  %v796_v54 = vsel %vm642_vm1, %v794_v48, %v792_v49 }
 0x12e   : > { %718 = vmatprep.subr.bf16.mxu0 %v696_v50  ;;  %v797_v61 = vmul.f32 %v795_v53, %v3465_v32  ;;  %v798_v62 = vmul.f32 %v796_v54, %v3472_v34 }
 0x12f   : > { %719 = vmatpush1.bf16.msra.mxu0 %v695_v51 }
 0x130   : > { %v802_v55 = vpop.permute.xlu1 %801  ;;  %v800_v56 = vpop.permute.xlu0 %799 }
 0x131   : > { %v803_v57 = vsel %vm659_vm3, %v800_v56, %v802_v55  ;;  %v804_v58 = vsel %vm659_vm3, %v802_v55, %v800_v56 }
 0x132   : > { %v805_v63 = vmul.f32 %v803_v57, %v3469_v33  ;;  %v806_v5 = vmul.f32 %v804_v58, %v3479_v37  ;;  %v562_v58 = vsub.s32 0, %v3438_v9 }
 0x134   : > { %v624_v7 = vpop.permute.xlu1 %623  ;;  %v622_v8 = vpop.permute.xlu0 %621  ;;  %v822_v12 = vpack.c.bf16 %v806_v5, %v798_v62  ;;  %v821_v13 = vpack.c.bf16 %v805_v63, %v797_v61  ;;  %v579_v61 = vsub.s32 1, %v3438_v9 }
 0x135   : > { %v626_v14 = vsel %vm625_vm4, %v622_v8, %v624_v7  ;;  %v627_v15 = vsel %vm625_vm4, %v624_v7, %v622_v8 }
 0x136   : > { %v636_v16 = vmul.f32 %v3504_v59, %v626_v14  ;;  %v637_v17 = vmul.f32 %v3507_v60, %v627_v15  ;;  %839 = vmatprep.subr.bf16.mxu1 %v822_v12  ;;  %v3573_v15 = vrot.slane %v3457_v22, %v562_v58 }
 0x137   : > { %840 = vmatpush1.bf16.msra.mxu1 %v821_v13 }
 0x138   : > { %v786_v18 = vpop.permute.xlu1 %785  ;;  %v784_v19 = vpop.permute.xlu0 %783  ;;  %v694_v20 = vpack.c.bf16 %v637_v17, %v3370_v3  ;;  %v693_v21 = vpack.c.bf16 %v636_v16, %v3362_v1  ;;  %v3576_v16 = vrot.slane %v3462_v25, %v562_v58  ;;  %v3580_v17 = vrot.slane %v3457_v22, %v579_v61  ;;  %v3634_v58 = vld [vmem:[#allocation11 + $0xcc] ss:$16 sps:$4 sm:$0xff]  }
 0x139   : > { %v787_v23 = vsel %vm625_vm4, %v784_v19, %v786_v18  ;;  %v788_v24 = vsel %vm625_vm4, %v786_v18, %v784_v19  ;;  %v3583_v18 = vrot.slane %v3462_v25, %v579_v61  ;;  %v3637_v61 = vld [vmem:[#allocation11 + $0x84] ss:$16 sps:$4 sm:$0xff]  }
 0x13a   : > { %v789_v27 = vmul.f32 %v787_v23, %v3504_v59  ;;  %v790_v28 = vmul.f32 %v788_v24, %v3507_v60  ;;  %720 = vmatprep.subr.bf16.mxu0 %v694_v20 }
 0x13b   : > { %721 = vmatpush1.bf16.msra.mxu0 %v693_v21 }
 0x13c   : > { %v590_v30 = vpop.permute.xlu1 %589  ;;  %v588_v1 = vpop.permute.xlu0 %587  ;;  %v820_v3 = vpack.c.bf16 %v790_v28, %v3368_v2  ;;  %v819_v31 = vpack.c.bf16 %v789_v27, %v3360_v0 }
 0x13d   : > { %v592_v2 = vsel %vm591_vm5, %v588_v1, %v590_v30  ;;  %v593_v0 = vsel %vm591_vm5, %v590_v30, %v588_v1 }
 0x13e   : > { %841 = vmatprep.subr.bf16.mxu1 %v820_v3  ;;  %v602_v44 = vmul.f32 %v3533_v35, %v593_v0  ;;  %v603_v45 = vmul.f32 %v3536_v36, %v592_v2 }
 0x13f   : > { %842 = vmatpush1.bf16.msra.mxu1 %v819_v31  ;;  %v3597_v31 = vld [vmem:[#allocation11 + $0xe4] ss:$16 sps:$4 sm:$0xff]  }
 0x140   : > { %v607_v40 = vpop.permute.xlu1 %606  ;;  %v605_v41 = vpop.permute.xlu0 %604 }
 0x141   : > { %v609_v42 = vsel %vm608_vm6, %v605_v41, %v607_v40  ;;  %v610_v43 = vsel %vm608_vm6, %v607_v40, %v605_v41  ;;  %v548_v40 = vld [vmem:[%s4229_s3] sm:$0xf] }
 0x142   : > { %v619_v46 = vmul.f32 %v3540_v38, %v610_v43  ;;  %v620_v47 = vmul.f32 %v3543_v39, %v609_v42  ;;  %v3606_v41 = vld [vmem:[#allocation11 + $0xe0] ss:$16 sps:$4 sm:$0xff]  }
 0x144   : > { %v770_v48 = vpop.permute.xlu1 %769  ;;  %v768_v49 = vpop.permute.xlu0 %767  ;;  %v692_v50 = vpack.c.bf16 %v620_v47, %v603_v45  ;;  %v691_v51 = vpack.c.bf16 %v619_v46, %v602_v44  ;;  %v3609_v44 = vld [vmem:[#allocation11 + $0xc4] ss:$16 sps:$4 sm:$0xff]  }
 0x145   : > { %v771_v52 = vsel %vm591_vm5, %v768_v49, %v770_v48  ;;  %v772_v53 = vsel %vm591_vm5, %v770_v48, %v768_v49 }
 0x146   : > { %722 = vmatprep.subr.bf16.mxu0 %v692_v50  ;;  %v773_v62 = vmul.f32 %v772_v53, %v3533_v35  ;;  %v774_v63 = vmul.f32 %v771_v52, %v3536_v36 }
 0x147   : > { %723 = vmatpush1.bf16.msra.mxu0 %v691_v51  ;;  %v3621_v51 = vld [vmem:[#allocation11 + $0xc0] ss:$16 sps:$4 sm:$0xff]  }
 0x148   : > { %v778_v54 = vpop.permute.xlu1 %777  ;;  %v776_v55 = vpop.permute.xlu0 %775 }
 0x149   : > { %v779_v56 = vsel %vm608_vm6, %v776_v55, %v778_v54  ;;  %v780_v57 = vsel %vm608_vm6, %v778_v54, %v776_v55  ;;  %v3623_v54 = vld [vmem:[#allocation11 + $0xec] ss:$16 sps:$4 sm:$0xff]   ;;  %v3626_v55 = vld [vmem:[#allocation11 + $0xa4] ss:$16 sps:$4 sm:$0xff]  }
 0x14a   : > { %v781_v5 = vmul.f32 %v780_v57, %v3540_v38  ;;  %v782_v7 = vmul.f32 %v779_v56, %v3543_v39  ;;  %v3628_v56 = vld [vmem:[#allocation11 + $0xe8] ss:$16 sps:$4 sm:$0xff]   ;;  %v3631_v57 = vld [vmem:[#allocation11 + $0xa0] ss:$16 sps:$4 sm:$0xff]  }
 0x14c   : > { %v554_v8 = vpop.permute.xlu1 %553  ;;  %v552_v12 = vpop.permute.xlu0 %551  ;;  %v818_v13 = vpack.c.bf16 %v782_v7, %v774_v63  ;;  %v817_v14 = vpack.c.bf16 %v781_v5, %v773_v62  ;;  %v3641_v62 = vld [vmem:[#allocation11 + $0xc8] ss:$16 sps:$4 sm:$0xff]   ;;  %v3644_v63 = vld [vmem:[#allocation11 + $0x80] ss:$16 sps:$4 sm:$0xff]   ;;  %v3647_v5 = vld [vmem:[#allocation11 + $0xac] ss:$16 sps:$4 sm:$0xff]  }
 0x14d   : > { %v558_v19 = vsel %vm557_vm7, %v552_v12, %v554_v8  ;;  %v559_v20 = vsel %vm557_vm7, %v554_v8, %v552_v12  ;;  %v3650_v7 = vld [vmem:[#allocation11 + $0x64] ss:$16 sps:$4 sm:$0xff]   ;;  %v3653_v8 = vld [vmem:[#allocation11 + $0xa8] ss:$16 sps:$4 sm:$0xff]   ;;  %v3656_v12 = vld [vmem:[#allocation11 + $0x60] ss:$16 sps:$4 sm:$0xff]  }
 0x14e   : > { %843 = vmatprep.subr.bf16.mxu1 %v818_v13  ;;  %v568_v22 = vmul.f32 %v3573_v15, %v559_v20  ;;  %v569_v25 = vmul.f32 %v3576_v16, %v558_v19  ;;  %v3659_v13 = vld [vmem:[#allocation11 + $0x8c] ss:$16 sps:$4 sm:$0xff]   ;;  %v3665_v19 = vld [vmem:[#allocation11 + $0x88] ss:$16 sps:$4 sm:$0xff]   ;;  %v3668_v20 = vld [vmem:[#allocation11 + $0x40] ss:$16 sps:$4 sm:$0xff]  }
 0x14f   : > { %844 = vmatpush1.bf16.msra.mxu1 %v817_v14  ;;  %v3662_v14 = vld [vmem:[#allocation11 + $0x44] ss:$16 sps:$4 sm:$0xff]  }
 0x150   : > { %v573_v21 = vpop.permute.xlu1 %572  ;;  %v571_v23 = vpop.permute.xlu0 %570 }
 0x151   : > { %v575_v24 = vsel %vm574_vm8, %v571_v23, %v573_v21  ;;  %v576_v26 = vsel %vm574_vm8, %v573_v21, %v571_v23  ;;  %v3671_v21 = vld [vmem:[#allocation11 + $0x6c] ss:$16 sps:$4 sm:$0xff]   ;;  %v3674_v23 = vld [vmem:[#allocation11 + $0x24] ss:$16 sps:$4 sm:$0xff]  }
 0x152   : > { %v585_v27 = vmul.f32 %v3580_v17, %v576_v26  ;;  %v586_v28 = vmul.f32 %v3583_v18, %v575_v24  ;;  %4335 = vst [vmem:[#allocation27_spill] sm:$0xff] %v3674_v23  ;;  %v3677_v24 = vld [vmem:[#allocation11 + $0x68] ss:$16 sps:$4 sm:$0xff]   ;;  %v3680_v26 = vld [vmem:[#allocation11 + $0x20] ss:$16 sps:$4 sm:$0xff]  }
 0x153   : > { %4336 = vst [vmem:[#allocation28_spill] sm:$0xff] %v3677_v24  ;;  %4337 = vst [vmem:[#allocation29_spill] sm:$0xff] %v3680_v26 }
 0x154   : > { %v754_v29 = vpop.permute.xlu1 %753  ;;  %v752_v30 = vpop.permute.xlu0 %751  ;;  %v690_v1 = vpack.c.bf16 %v586_v28, %v569_v25  ;;  %v689_v3 = vpack.c.bf16 %v585_v27, %v568_v22  ;;  %v3683_v22 = vld [vmem:[#allocation11 + $0x4c] ss:$16 sps:$4 sm:$0xff]   ;;  %v3686_v25 = vld [vmem:[#allocation11 + $0x4] ss:$16 sps:$4 sm:$0xff]   ;;  %v3689_v27 = vld [vmem:[#allocation11 + $0x48] ss:$16 sps:$4 sm:$0xff]  }
 0x155   : > { %v755_v2 = vsel %vm557_vm7, %v752_v30, %v754_v29  ;;  %v756_v0 = vsel %vm557_vm7, %v754_v29, %v752_v30  ;;  %4338 = vst [vmem:[#allocation30_spill] sm:$0xff] %v3683_v22  ;;  %4339 = vst [vmem:[#allocation31_spill] sm:$0xff] %v3686_v25  ;;  %v3692_v28 = vld [vmem:[#allocation11] ss:$16 sps:$4 sm:$0xff]   ;;  %v3695_v29 = vld [vmem:[#allocation11 + $0x2c] ss:$16 sps:$4 sm:$0xff]  }
 0x156   : > { %724 = vmatprep.subr.bf16.mxu0 %v690_v1  ;;  %v757_v47 = vmul.f32 %v756_v0, %v3573_v15  ;;  %v758_v48 = vmul.f32 %v755_v2, %v3576_v16  ;;  %4340 = vst [vmem:[#allocation32_spill] sm:$0xff] %v3689_v27  ;;  %4341 = vst [vmem:[#allocation33_spill] sm:$0xff] %v3692_v28  ;;  %v3698_v30 = vld [vmem:[#allocation11 + $0x1e4] ss:$16 sps:$4 sm:$0xff]   ;;  %v3701_v1 = vld [vmem:[#allocation11 + $0x28] ss:$16 sps:$4 sm:$0xff]  }
 0x157   : > { %725 = vmatpush1.bf16.msra.mxu0 %v689_v3  ;;  %4342 = vst [vmem:[#allocation34_spill] sm:$0xff] %v3695_v29  ;;  %4343 = vst [vmem:[#allocation35_spill] sm:$0xff] %v3698_v30  ;;  %v3704_v3 = vld [vmem:[#allocation11 + $0x1e0] ss:$16 sps:$4 sm:$0xff]   ;;  %v3707_v2 = vld [vmem:[#allocation11 + $0xc] ss:$16 sps:$4 sm:$0xff]  }
 0x158   : > { %v762_v42 = vpop.permute.xlu1 %761  ;;  %v760_v43 = vpop.permute.xlu0 %759  ;;  %1270 = vmatprep.subr.bf16.mxu0 %v3597_v31  ;;  %4344 = vst [vmem:[#allocation36_spill] sm:$0xff] %v3701_v1  ;;  %4345 = vst [vmem:[#allocation37_spill] sm:$0xff] %v3704_v3  ;;  %v3710_v0 = vld [vmem:[#allocation11 + $0x1c4] ss:$16 sps:$4 sm:$0xff]  }
 0x159   : > { %v763_v45 = vsel %vm574_vm8, %v760_v43, %v762_v42  ;;  %v764_v46 = vsel %vm574_vm8, %v762_v42, %v760_v43  ;;  %4346 = vst [vmem:[#allocation38_spill] sm:$0xff] %v3707_v2  ;;  %4347 = vst [vmem:[#allocation39_spill] sm:$0xff] %v3710_v0  ;;  %v3716_v42 = vld [vmem:[#allocation11 + $0x1c0] ss:$16 sps:$4 sm:$0xff]   ;;  %v3719_v43 = vld [vmem:[#allocation11 + $0x1ec] ss:$16 sps:$4 sm:$0xff]  }
 0x15a   : > { %v765_v49 = vmul.f32 %v764_v46, %v3580_v17  ;;  %v766_v50 = vmul.f32 %v763_v45, %v3583_v18  ;;  %2402 = vmatmul.mubr.msk.bf16.vlgmr.msra.gmra.mxu0 %vm699_vm9, %v548_v40  ;;  %4349 = vst [vmem:[#allocation41_spill] sm:$0xff] %v3716_v42  ;;  %4350 = vst [vmem:[#allocation42_spill] sm:$0xff] %v3719_v43  ;;  %v3722_v45 = vld [vmem:[#allocation11 + $0x1a4] ss:$16 sps:$4 sm:$0xff]   ;;  %v3725_v46 = vld [vmem:[#allocation11 + $0x1e8] ss:$16 sps:$4 sm:$0xff]  }
 0x15b   : > { %1271 = vmatpush1.bf16.msra.mxu0 %v3606_v41  ;;  %4351 = vst [vmem:[#allocation43_spill] sm:$0xff] %v3722_v45  ;;  %4352 = vst [vmem:[#allocation44_spill] sm:$0xff] %v3725_v46  ;;  %v4379_v6 = vld [vmem:[#allocation27_spill] sm:$0xff] }
 0x15c   : > { %v816_v52 = vpack.c.bf16 %v766_v50, %v758_v48  ;;  %v815_v53 = vpack.c.bf16 %v765_v49, %v757_v47  ;;  %1272 = vmatprep.subr.bf16.mxu0 %v3609_v44  ;;  %v3728_v47 = vld [vmem:[#allocation11 + $0x1a0] ss:$16 sps:$4 sm:$0xff]   ;;  %v3731_v48 = vld [vmem:[#allocation11 + $0x1cc] ss:$16 sps:$4 sm:$0xff]   ;;  %v3734_v49 = vld [vmem:[#allocation11 + $0x184] ss:$16 sps:$4 sm:$0xff]  }
 0x15d   : > { %4353 = vst [vmem:[#allocation45_spill] sm:$0xff] %v3728_v47  ;;  %4354 = vst [vmem:[#allocation46_spill] sm:$0xff] %v3731_v48  ;;  %v3737_v50 = vld [vmem:[#allocation11 + $0x1c8] ss:$16 sps:$4 sm:$0xff]  }
 0x15e   : > { %845 = vmatprep.subr.bf16.mxu1 %v816_v52  ;;  %4355 = vst [vmem:[#allocation47_spill] sm:$0xff] %v3734_v49  ;;  %4356 = vst [vmem:[#allocation48_spill] sm:$0xff] %v3737_v50  ;;  %v3740_v52 = vld [vmem:[#allocation11 + $0x180] ss:$16 sps:$4 sm:$0xff]  }
 0x15f   : > { %846 = vmatpush1.bf16.msra.mxu1 %v815_v53  ;;  %1273 = vmatpush1.bf16.msra.mxu0 %v3621_v51  ;;  %4357 = vst [vmem:[#allocation49_spill] sm:$0xff] %v3740_v52  ;;  %v3743_v53 = vld [vmem:[#allocation11 + $0x1ac] ss:$16 sps:$4 sm:$0xff]  }
 0x160   : > { %1313 = vmatprep.subr.bf16.mxu1 %v3623_v54  ;;  %1274 = vmatprep.subr.bf16.mxu0 %v3626_v55  ;;  %4358 = vst [vmem:[#allocation50_spill] sm:$0xff] %v3743_v53 }
 0x162   : > { %2404 = vmatmul.mubr.msk.bf16.vlgmr.msra.gmra.mxu1 %vm699_vm9, %v548_v40  ;;  %v3713_v40 = vld [vmem:[#allocation11 + $0x8] ss:$16 sps:$4 sm:$0xff]  }
 0x163   : > { %1314 = vmatpush1.bf16.msra.mxu1 %v3628_v56  ;;  %1275 = vmatpush1.bf16.msra.mxu0 %v3631_v57  ;;  %4348 = vst [vmem:[#allocation40_spill] sm:$0xff] %v3713_v40 }
 0x164   : > { %1315 = vmatprep.subr.bf16.mxu1 %v3634_v58  ;;  %1276 = vmatprep.subr.bf16.mxu0 %v3637_v61 }
 0x167   : > { %1316 = vmatpush1.bf16.msra.mxu1 %v3641_v62  ;;  %1277 = vmatpush1.bf16.msra.mxu0 %v3644_v63 }
 0x168   : > { %1317 = vmatprep.subr.bf16.mxu1 %v3647_v5  ;;  %1278 = vmatprep.subr.bf16.mxu0 %v3650_v7 }
 0x16b   : > { %1318 = vmatpush1.bf16.msra.mxu1 %v3653_v8  ;;  %1279 = vmatpush1.bf16.msra.mxu0 %v3656_v12 }
 0x16c   : > { %1319 = vmatprep.subr.bf16.mxu1 %v3659_v13  ;;  %1280 = vmatprep.subr.bf16.mxu0 %v3662_v14 }
 0x16f   : > { %1320 = vmatpush1.bf16.msra.mxu1 %v3665_v19  ;;  %1281 = vmatpush1.bf16.msra.mxu0 %v3668_v20 }
 0x170   : > { %1321 = vmatprep.subr.bf16.mxu1 %v3671_v21  ;;  %1282 = vmatprep.subr.bf16.mxu0 %v3674_v23 }
 0x173   : > { %1322 = vmatpush1.bf16.msra.mxu1 %v3677_v24  ;;  %1283 = vmatpush1.bf16.msra.mxu0 %v3680_v26 }
 0x174   : > { %1323 = vmatprep.subr.bf16.mxu1 %v3683_v22  ;;  %1284 = vmatprep.subr.bf16.mxu0 %v3686_v25 }
 0x177   : > { %1324 = vmatpush1.bf16.msra.mxu1 %v3689_v27  ;;  %1285 = vmatpush1.bf16.msra.mxu0 %v3692_v28  ;;  %v877_v28 = vld [vmem:[%s3343_s14 + $0x8] sm:$0xff]  ;;  %v879_v27 = vld [vmem:[%s3343_s14 + $0x18] sm:$0xff] }
 0x178   : > { %1325 = vmatprep.subr.bf16.mxu1 %v3695_v29  ;;  %1286 = vmatprep.subr.bf16.mxu0 %v3698_v30  ;;  %v878_v30 = vld [vmem:[%s3343_s14 + $0x10] sm:$0xff] }
 0x17b   : > { %1326 = vmatpush1.bf16.msra.mxu1 %v3701_v1  ;;  %1287 = vmatpush2.bf16.msra.mxu0 %v3704_v3 }
 0x17c   : > { %1327 = vmatprep.subr.bf16.mxu1 %v3707_v2  ;;  %1288 = vmatprep.subr.bf16.mxu0 %v3710_v0  ;;  %v876_v2 = vld [vmem:[%s3343_s14] sm:$0xff]  ;;  %s3868_s14 = scalar_lea.vmem [#allocation14], %s3333_s26 }
 0x17f   : > { %1328 = vmatpush1.bf16.msra.mxu1 %v3713_v40  ;;  %1289 = vmatpush2.bf16.msra.mxu0 %v3716_v42 }
 0x180   : > { %1329 = vmatprep.subr.bf16.mxu1 %v3719_v43  ;;  %1290 = vmatprep.subr.bf16.mxu0 %v3722_v45  ;;  %v3764_v45 = vld [vmem:[#allocation11 + $0x168] ss:$16 sps:$4 sm:$0xff]  }
 0x181   : > { %4365 = vst [vmem:[#allocation57_spill] sm:$0xff] %v3764_v45 }
 0x183   : > { %1330 = vmatpush2.bf16.msra.mxu1 %v3725_v46  ;;  %1291 = vmatpush2.bf16.msra.mxu0 %v3728_v47  ;;  %v3751_v46 = vld [vmem:[#allocation11 + $0x18c] ss:$16 sps:$4 sm:$0xff]   ;;  %v3754_v47 = vld [vmem:[#allocation11 + $0x188] ss:$16 sps:$4 sm:$0xff]  }
 0x184   : > { %1331 = vmatprep.subr.bf16.mxu1 %v3731_v48  ;;  %1292 = vmatprep.subr.bf16.mxu0 %v3734_v49  ;;  %4360 = vst [vmem:[#allocation52_spill] sm:$0xff] %v3751_v46  ;;  %4361 = vst [vmem:[#allocation53_spill] sm:$0xff] %v3754_v47  ;;  %v3758_v48 = vld [vmem:[#allocation11 + $0x164] ss:$16 sps:$4 sm:$0xff]   ;;  %v3760_v49 = vld [vmem:[#allocation11 + $0x16c] ss:$16 sps:$4 sm:$0xff]  }
 0x185   : > { %4362 = vst [vmem:[#allocation54_spill] sm:$0xff] %v3758_v48  ;;  %4363 = vst [vmem:[#allocation55_spill] sm:$0xff] %v3760_v49 }
 0x187   : > { %1332 = vmatpush2.bf16.msra.mxu1 %v3737_v50  ;;  %1293 = vmatpush2.bf16.msra.mxu0 %v3740_v52  ;;  %v3762_v50 = vld [vmem:[#allocation11 + $0x160] ss:$16 sps:$4 sm:$0xff]   ;;  %v550_v52 = vld [vmem:[%s4230_s4 + $0x8] sm:$0xff] }
 0x188   : > { %1333 = vmatprep.subr.bf16.mxu1 %v3743_v53  ;;  %4364 = vst [vmem:[#allocation56_spill] sm:$0xff] %v3762_v50  ;;  %1294 = vmatprep.subr.bf16.mxu0 %v3758_v48  ;;  %v3776_v53 = vld [vmem:[#allocation11 + $0x148] ss:$16 sps:$4 sm:$0xff]  }
 0x189   : > { %4369 = vst [vmem:[#allocation61_spill] sm:$0xff] %v3776_v53  ;;  %v3788_v48 = vld [vmem:[#allocation11 + $0x128] ss:$16 sps:$4 sm:$0xff]  }
 0x18a   : > { %4373 = vst [vmem:[#allocation65_spill] sm:$0xff] %v3788_v48 }
 0x18b   : > { %1334 = vmatpush2.bf16.msra.mxu1 %v3747_v4  ;;  %1295 = vmatpush2.bf16.msra.mxu0 %v3762_v50  ;;  %v3770_v4 = vld [vmem:[#allocation11 + $0x144] ss:$16 sps:$4 sm:$0xff]   ;;  %v3784_v50 = vld [vmem:[#allocation11 + $0x12c] ss:$16 sps:$4 sm:$0xff]  }
 0x18c   : > { %1335 = vmatprep.subr.bf16.mxu1 %v3751_v46  ;;  %4366 = vst [vmem:[#allocation58_spill] sm:$0xff] %v3770_v4  ;;  %v3772_v46 = vld [vmem:[#allocation11 + $0x14c] ss:$16 sps:$4 sm:$0xff]   ;;  %1296 = vmatprep.subr.bf16.mxu0 %v3770_v4  ;;  %4371 = vst [vmem:[#allocation63_spill] sm:$0xff] %v3784_v50  ;;  %v3800_v4 = vld [vmem:[#allocation11 + $0x108] ss:$16 sps:$4 sm:$0xff]  }
 0x18d   : > { %4367 = vst [vmem:[#allocation59_spill] sm:$0xff] %v3772_v46  ;;  %4377 = vst [vmem:[#allocation69_spill] sm:$0xff] %v3800_v4 }
 0x18f   : > { %1336 = vmatpush2.bf16.msra.mxu1 %v3754_v47  ;;  %v3774_v47 = vld [vmem:[#allocation11 + $0x140] ss:$16 sps:$4 sm:$0xff]  }
 0x190   : > { %1337 = vmatprep.subr.bf16.mxu1 %v3760_v49  ;;  %4368 = vst [vmem:[#allocation60_spill] sm:$0xff] %v3774_v47  ;;  %1297 = vmatpush2.bf16.msra.mxu0 %v3774_v47  ;;  %v3782_v49 = vld [vmem:[#allocation11 + $0x124] ss:$16 sps:$4 sm:$0xff]   ;;  %v3796_v47 = vld [vmem:[#allocation11 + $0x10c] ss:$16 sps:$4 sm:$0xff]  }
 0x191   : > { %4370 = vst [vmem:[#allocation62_spill] sm:$0xff] %v3782_v49  ;;  %1298 = vmatprep.subr.bf16.mxu0 %v3782_v49  ;;  %4375 = vst [vmem:[#allocation67_spill] sm:$0xff] %v3796_v47 }
 0x193   : > { %1338 = vmatpush2.bf16.msra.mxu1 %v3764_v45  ;;  %v3786_v45 = vld [vmem:[#allocation11 + $0x120] ss:$16 sps:$4 sm:$0xff]  }
 0x194   : > { %1339 = vmatprep.subr.bf16.mxu1 %v3772_v46  ;;  %4372 = vst [vmem:[#allocation64_spill] sm:$0xff] %v3786_v45  ;;  %1299 = vmatpush2.bf16.msra.mxu0 %v3786_v45  ;;  %v3794_v46 = vld [vmem:[#allocation11 + $0x104] ss:$16 sps:$4 sm:$0xff]   ;;  %v4378_v45 = vmov 0  }
 0x195   : > { %4374 = vst [vmem:[#allocation66_spill] sm:$0xff] %v3794_v46  ;;  %1300 = vmatprep.subr.bf16.mxu0 %v3794_v46 }
 0x197   : > { %1340 = vmatpush2.bf16.msra.mxu1 %v3776_v53  ;;  %v3798_v53 = vld [vmem:[#allocation11 + $0x100] ss:$16 sps:$4 sm:$0xff]  }
 0x198   : > { %1341 = vmatprep.subr.bf16.mxu1 %v3784_v50  ;;  %4376 = vst [vmem:[#allocation68_spill] sm:$0xff] %v3798_v53  ;;  %1301 = vmatpush2.bf16.msra.mxu0 %v3798_v53  ;;  %v540_v50 = vld [vmem:[%s4235_s9] sm:$0xff] }
 0x199   : > { %vm542_vm11 = vcmp.gt.f32.partialorder %v540_v50, 0.0  ;;  %v549_v53 = vld [vmem:[%s4230_s4] sm:$0xff] }
 0x19a   : > { %v1367_v46 = vsel %vm542_vm11, 1, %v4378_v45 }
 0x19b   : > { %1342 = vmatpush2.bf16.msra.mxu1 %v3788_v48  ;;  %v541_v48 = vld [vmem:[%s4235_s9 + $0x8] sm:$0xff]  ;;  %1370 = vperm.xlu0 %2654, %v1367_v46  }
 0x19c   : > { %1343 = vmatprep.subr.bf16.mxu1 %v3796_v47  ;;  %vm543_vm10 = vcmp.gt.f32.partialorder %v541_v48, 0.0 }
 0x19d   : > { %v1368_v49 = vsel %vm543_vm10, 1, %v4378_v45 }
 0x19e   : > { %1373 = vperm.xlu1 %2655, %v1368_v49  }
 0x19f   : > { %1344 = vmatpush2.bf16.msra.mxu1 %v3800_v4  ;;  %1388 = vperm.xlu0 %2654, %v541_v48  }
 0x1a2   : > { %1383 = vperm.xlu1 %2655, %v540_v50  }
 0x21a   : > { %v744_v4 = vpop.f32.mrf.mxu0 }
 0x21b   : > { %v745_v42 = vadd.f32 %v744_v4, %v549_v53 }
 0x21c   : > { %v746_v47 = vpop.f32.mrf.mxu0 }
 0x21d   : > { %v747_v40 = vadd.f32 %v746_v47, %v550_v52  ;;  %v872_v48 = vmax.f32 %v745_v42, 0.0 }
 0x21e   : > { %v748_v43 = vpop.f32.mrf.mxu0 }
 0x21f   : > { %v873_v3 = vmax.f32 %v747_v40, 0.0  ;;  %v880_v26 = vadd.f32 %v876_v2, %v872_v48 }
 0x220   : > { %v749_v49 = vpop.f32.mrf.mxu0 }
 0x221   : > { %v881_v43 = vadd.f32 %v877_v28, %v873_v3 }
 0x222   : > { %v865_v46 = vpop.f32.mrf.mxu1 }
 0x223   : > { %v866_v50 = vadd.f32 %v865_v46, %v549_v53 }
 0x224   : > { %v867_v0 = vpop.f32.mrf.mxu1 }
 0x225   : > { %v874_v1 = vmax.f32 %v866_v50, 0.0  ;;  %v868_v29 = vadd.f32 %v867_v0, %v550_v52  ;;  %v3826_v0 = vpop.permute.xlu0 %1370 }
 0x226   : > { %v869_v25 = vpop.f32.mrf.mxu1  ;;  %vm1375_vm14 = vcmp.eq.s32.totalorder %v3826_v0, 1 }
 0x227   : > { %v875_v22 = vmax.f32 %v868_v29, 0.0  ;;  %v882_v24 = vadd.f32 %v878_v30, %v874_v1  ;;  %v3828_v29 = vpop.permute.xlu1 %1373 }
 0x228   : > { %v870_v23 = vpop.f32.mrf.mxu1  ;;  %vm1376_vm13 = vcmp.eq.s32.totalorder %v3828_v29, 1 }
 0x229   : > { %v883_v4 = vadd.f32 %v879_v27, %v875_v22  ;;  %v884_v47 = vpack.c.bf16 %v882_v24, %v880_v26  ;;  %v3833_v27 = vpop.permute.xlu0 %1388 }
 0x22b   : > { %v885_v49 = vpack.c.bf16 %v883_v4, %v881_v43  ;;  %v3839_v52 = vpop.permute.xlu1 %1383 }
 0x22d   : > { %1302 = vmatprep.mubr.bf16.mxu0 %v885_v49  ;;  %1345 = vmatprep.mubr.bf16.mxu1 %v885_v49 }
 0x22e   : > { %1303 = vmatmul.mubr.bf16.vlgmr.msra.gmra.mxu0 %v884_v47  ;;  %1346 = vmatmul.mubr.bf16.vlgmr.msra.gmra.mxu1 %v884_v47 }
 0x22f   : > { %1525 = vmatprep.mubr.bf16.mxu0 %v4378_v45  ;;  %1646 = vmatprep.mubr.bf16.mxu1 %v4378_v45 }
 0x2ee   : > { %v1304_v40 = vpop.f32.mrf.mxu0  ;;  %v1347_v25 = vpop.f32.mrf.mxu1 }
 0x2ef   : > { %v1356_v24 = vrot.slane %v1347_v25, 4 }
 0x2f0   : > { %v1349_v30 = vpop.f32.mrf.mxu1  ;;  %v1306_v23 = vpop.f32.mrf.mxu0 }
 0x2f1   : > { %v1357_v1 = vrot.slane %v1349_v30, 4 }
 0x2f2   : > { %v1351_v28 = vpop.f32.mrf.mxu1  ;;  %v1308_v45 = vpop.f32.mrf.mxu0 }
 0x2f3   : > { %v1358_v26 = vrot.slane %v1351_v28, 4 }
 0x2f4   : > { %v1353_v22 = vpop.f32.mrf.mxu1 }
 0x2f5   : > { %v1363_v3 = vsel %vm1362_vm12, %v1356_v24, %v1358_v26  ;;  %v1365_v2 = vsel %vm1362_vm12, %v1358_v26, %v1356_v24  ;;  %v1359_v42 = vrot.slane %v1353_v22, 4  ;;  %v1310_v26 = vpop.f32.mrf.mxu0 }
 0x2f6   : > { %v1377_v53 = vsel %vm1375_vm14, %v1363_v3, %v1365_v2  ;;  %v1379_v46 = vsel %vm1376_vm13, %v1365_v2, %v1363_v3 }
 0x2f7   : > { %v1391_v50 = vmul.f32 %v3839_v52, %v1377_v53  ;;  %v1364_v48 = vsel %vm1362_vm12, %v1357_v1, %v1359_v42  ;;  %v1366_v43 = vsel %vm1362_vm12, %v1359_v42, %v1357_v1  ;;  %v1393_v4 = vmul.f32 %v3833_v27, %v1379_v46 }
 0x2f8   : > { %v1378_v49 = vsel %vm1375_vm14, %v1364_v48, %v1366_v43  ;;  %v1380_v47 = vsel %vm1376_vm13, %v1366_v43, %v1364_v48 }
 0x2f9   : > { %v1395_v25 = vsub.f32 %v1304_v40, %v1391_v50  ;;  %v1392_v30 = vmul.f32 %v3839_v52, %v1378_v49  ;;  %v1394_v28 = vmul.f32 %v3833_v27, %v1380_v47  ;;  %v1397_v24 = vsub.f32 %v1308_v45, %v1393_v4 }
 0x2fb   : > { %v3857_v22 = vmul.f32 0.00390625, %v1395_v25  ;;  %v1396_v3 = vsub.f32 %v1306_v23, %v1392_v30  ;;  %v1398_v1 = vsub.f32 %v1310_v26, %v1394_v28  ;;  %v3859_v2 = vmul.f32 0.00390625, %v1397_v24 }
 0x2fd   : > { %v3861_v42 = vmul.f32 0.00390625, %v1396_v3  ;;  %v3863_v53 = vmul.f32 0.00390625, %v1398_v1  ;;  %1466 = vrot.lane.b32.xlu1 %v3857_v22, %s3030_s28  ;;  %1403 = vst [vmem:[%s3868_s14] sm:$0xff] %v3857_v22  ;;  %1405 = vst [vmem:[%s3868_s14 + $0x10] sm:$0xff] %v3859_v2 }
 0x2ff   : > { %1468 = vrot.lane.b32.xlu0 %v3861_v42, %s3030_s28  ;;  %1404 = vst [vmem:[%s3868_s14 + $0x8] sm:$0xff] %v3861_v42  ;;  %1406 = vst [vmem:[%s3868_s14 + $0x18] sm:$0xff] %v3863_v53 }
 0x301   : > { %1590 = vrot.lane.b32.xlu1 %v3859_v2, %s3030_s28 }
 0x303   : > { %1592 = vrot.lane.b32.xlu0 %v3863_v53, %s3030_s28 }
 0x305   : > { %1450 = vrot.lane.b32.xlu1 %v3857_v22, %s3031_s10 }
 0x307   : > { %1452 = vrot.lane.b32.xlu0 %v3861_v42, %s3031_s10 }
 0x309   : > { %1458 = vrot.lane.b32.xlu1 %v3857_v22, %s3032_s20 }
 0x30b   : > { %1460 = vrot.lane.b32.xlu0 %v3861_v42, %s3032_s20 }
 0x30d   : > { %1574 = vrot.lane.b32.xlu1 %v3859_v2, %s3031_s10 }
 0x30f   : > { %1576 = vrot.lane.b32.xlu0 %v3863_v53, %s3031_s10 }
 0x311   : > { %1582 = vrot.lane.b32.xlu1 %v3859_v2, %s3032_s20 }
 0x313   : > { %1584 = vrot.lane.b32.xlu0 %v3863_v53, %s3032_s20  ;;  %s2548_s20 = sshll.u32 %s3123_s21, 9 }
 0x315   : > { %1442 = vrot.lane.b32.xlu1 %v3857_v22, %s3033_s15 }
 0x317   : > { %1444 = vrot.lane.b32.xlu0 %v3861_v42, %s3033_s15 }
 0x319   : > { %1566 = vrot.lane.b32.xlu1 %v3859_v2, %s3033_s15 }
 0x31b   : > { %1568 = vrot.lane.b32.xlu0 %v3863_v53, %s3033_s15 }
 0x31d   : > { %1426 = vrot.lane.b32.xlu1 %v3857_v22, %s3034_s1 }
 0x31f   : > { %1428 = vrot.lane.b32.xlu0 %v3861_v42, %s3034_s1 }
 0x321   : > { %1434 = vrot.lane.b32.xlu1 %v3857_v22, %s3035_s16 }
 0x323   : > { %1436 = vrot.lane.b32.xlu0 %v3861_v42, %s3035_s16 }
 0x325   : > { %1550 = vrot.lane.b32.xlu1 %v3859_v2, %s3034_s1 }
 0x327   : > { %1552 = vrot.lane.b32.xlu0 %v3863_v53, %s3034_s1  ;;  %s4422_s1 = sld [smem:[#allocation74_spill]] }
 0x329   : > { %1558 = vrot.lane.b32.xlu1 %v3859_v2, %s3035_s16 }
 0x32b   : > { %1560 = vrot.lane.b32.xlu0 %v3863_v53, %s3035_s16 }
 0x32d   : > { %1410 = vrot.lane.b32.xlu1 %v3857_v22, %s3036_s30  ;;  %s4123_s16 = scalar_lea.hbm %s4422_s1, %s2548_s20 }
 0x32f   : > { %1412 = vrot.lane.b32.xlu0 %v3861_v42, %s3036_s30 }
 0x331   : > { %1418 = vrot.lane.b32.xlu1 %v3857_v22, %s3038_s11 }
 0x333   : > { %1420 = vrot.lane.b32.xlu0 %v3861_v42, %s3038_s11 }
 0x335   : > { %1534 = vrot.lane.b32.xlu1 %v3859_v2, %s3036_s30 }
 0x337   : > { %1536 = vrot.lane.b32.xlu0 %v3863_v53, %s3036_s30  ;;  %s2198_s30 = sshll.u32 %s3868_s14, 4  ;;  %s4126_s30 = int_to_ptr.vmem [resolvable:$true] %s2198_s30 }
 0x338   : > { %s2914_s13 = scalar_lea.vmem %s4126_s30, 512  ;;  %p2921_p11 = scmp.lt.s32.totalorder %s4126_s30, %s2919_s24 }
 0x339   : > { %1542 = vrot.lane.b32.xlu1 %v3859_v2, %s3038_s11  ;;  %p2915_p13 = scmp.ne.s32.totalorder %s4126_s30, %s2914_s13  ;;  %p2922_p3 = scmp.lt.s32.totalorder %s2920_s12, %s2914_s13 }
 0x33b   : > { %1544 = vrot.lane.b32.xlu0 %v3863_v53, %s3038_s11  ;;  %p2916_p7 = pnand %p2915_p13, %p4423_p0  ;;  %p2923_p9 = por %p2922_p3, %p2921_p11 }
 0x33d   : > { %p2917_p1 = pneg %p2916_p7 }
 0x33f   : > { %p2924_p10 = pnand %p2923_p9, %p2917_p1 }
 0x36f   : > { %v1467_v40 = vpop.permute.xlu1 %1466 }
 0x371   : > { %v1469_v23 = vpop.permute.xlu0 %1468 }
 0x372   : > { %v1470_v45 = vsel %vm676_vm0, %v1467_v40, %v1469_v23  ;;  %v1471_v46 = vsel %vm676_vm0, %v1469_v23, %v1467_v40 }
 0x373   : > { %v1472_v50 = vmul.f32 %v3441_v10, %v1470_v45  ;;  %v1473_v48 = vmul.f32 %v3443_v11, %v1471_v46  ;;  %v1591_v43 = vpop.permute.xlu1 %1590 }
 0x375   : > { %v1482_v4 = vpack.c.bf16 %v1472_v50, %v1472_v50  ;;  %v1483_v49 = vpack.c.bf16 %v1473_v48, %v1473_v48  ;;  %v1593_v47 = vpop.permute.xlu0 %1592 }
 0x376   : > { %v1594_v25 = vsel %vm676_vm0, %v1591_v43, %v1593_v47  ;;  %v1595_v30 = vsel %vm676_vm0, %v1593_v47, %v1591_v43 }
 0x377   : > { %v1596_v28 = vmul.f32 %v3441_v10, %v1594_v25  ;;  %v1597_v24 = vmul.f32 %v3443_v11, %v1595_v30  ;;  %2469 = vmatprep.subr.msk.bf16.mxu0 %vm703_vm2, %v1483_v49  ;;  %v1451_v26 = vpop.permute.xlu1 %1450  ;;  %v1488_v3 = vsel %vm703_vm2, %v1482_v4, 0 }
 0x378   : > { %1500 = vmatpush1.bf16.msra.mxu0 %v1488_v3 }
 0x379   : > { %v1606_v1 = vpack.c.bf16 %v1596_v28, %v1596_v28  ;;  %v1607_v40 = vpack.c.bf16 %v1597_v24, %v1597_v24  ;;  %v1453_v23 = vpop.permute.xlu0 %1452 }
 0x37a   : > { %v1454_v50 = vsel %vm642_vm1, %v1451_v26, %v1453_v23  ;;  %v1455_v10 = vsel %vm642_vm1, %v1453_v23, %v1451_v26 }
 0x37b   : > { %v1459_v45 = vpop.permute.xlu1 %1458  ;;  %2471 = vmatprep.subr.msk.bf16.mxu1 %vm703_vm2, %v1607_v40  ;;  %v1609_v46 = vsel %vm703_vm2, %v1606_v1, 0  ;;  %v1456_v4 = vmul.f32 %v1454_v50, %v3465_v32  ;;  %v1457_v49 = vmul.f32 %v1455_v10, %v3472_v34 }
 0x37c   : > { %1621 = vmatpush1.bf16.msra.mxu1 %v1609_v46 }
 0x37d   : > { %v1461_v11 = vpop.permute.xlu0 %1460 }
 0x37e   : > { %v1462_v48 = vsel %vm659_vm3, %v1459_v45, %v1461_v11  ;;  %v1463_v43 = vsel %vm659_vm3, %v1461_v11, %v1459_v45 }
 0x37f   : > { %v1464_v47 = vmul.f32 %v1462_v48, %v3469_v33  ;;  %v1465_v25 = vmul.f32 %v1463_v43, %v3479_v37  ;;  %v1575_v30 = vpop.permute.xlu1 %1574 }
 0x381   : > { %v1480_v28 = vpack.c.bf16 %v1464_v47, %v1456_v4  ;;  %v1577_v24 = vpop.permute.xlu0 %1576  ;;  %v1481_v26 = vpack.c.bf16 %v1465_v25, %v1457_v49 }
 0x382   : > { %v1578_v1 = vsel %vm642_vm1, %v1575_v30, %v1577_v24  ;;  %v1579_v40 = vsel %vm642_vm1, %v1577_v24, %v1575_v30 }
 0x383   : > { %v1583_v3 = vpop.permute.xlu1 %1582  ;;  %1501 = vmatprep.subr.bf16.mxu0 %v1481_v26  ;;  %v1580_v50 = vmul.f32 %v1578_v1, %v3465_v32  ;;  %v1581_v10 = vmul.f32 %v1579_v40, %v3472_v34 }
 0x384   : > { %1502 = vmatpush1.bf16.msra.mxu0 %v1480_v28 }
 0x385   : > { %v1585_v23 = vpop.permute.xlu0 %1584 }
 0x386   : > { %v1586_v45 = vsel %vm659_vm3, %v1583_v3, %v1585_v23  ;;  %v1587_v46 = vsel %vm659_vm3, %v1585_v23, %v1583_v3 }
 0x387   : > { %v1588_v11 = vmul.f32 %v1586_v45, %v3469_v33  ;;  %v1589_v48 = vmul.f32 %v1587_v46, %v3479_v37  ;;  %v1443_v43 = vpop.permute.xlu1 %1442 }
 0x389   : > { %v1604_v4 = vpack.c.bf16 %v1588_v11, %v1580_v50  ;;  %v1445_v49 = vpop.permute.xlu0 %1444  ;;  %v1605_v47 = vpack.c.bf16 %v1589_v48, %v1581_v10 }
 0x38a   : > { %v1446_v25 = vsel %vm625_vm4, %v1443_v43, %v1445_v49  ;;  %v1447_v30 = vsel %vm625_vm4, %v1445_v49, %v1443_v43 }
 0x38b   : > { %v1448_v28 = vmul.f32 %v1446_v25, %v3504_v59  ;;  %v1449_v32 = vmul.f32 %v1447_v30, %v3507_v60  ;;  %v1567_v24 = vpop.permute.xlu1 %1566  ;;  %1622 = vmatprep.subr.bf16.mxu1 %v1605_v47 }
 0x38c   : > { %1623 = vmatpush1.bf16.msra.mxu1 %v1604_v4 }
 0x38d   : > { %v1478_v33 = vpack.c.bf16 %v1448_v28, %v3857_v22  ;;  %v1569_v34 = vpop.permute.xlu0 %1568  ;;  %v1479_v37 = vpack.c.bf16 %v1449_v32, %v3861_v42 }
 0x38e   : > { %v1570_v26 = vsel %vm625_vm4, %v1567_v24, %v1569_v34  ;;  %v1571_v3 = vsel %vm625_vm4, %v1569_v34, %v1567_v24 }
 0x38f   : > { %v1572_v1 = vmul.f32 %v1570_v26, %v3504_v59  ;;  %v1573_v40 = vmul.f32 %v1571_v3, %v3507_v60  ;;  %v1427_v23 = vpop.permute.xlu1 %1426  ;;  %1503 = vmatprep.subr.bf16.mxu0 %v1479_v37 }
 0x390   : > { %1504 = vmatpush1.bf16.msra.mxu0 %v1478_v33 }
 0x391   : > { %v1602_v45 = vpack.c.bf16 %v1572_v1, %v3859_v2  ;;  %v1429_v46 = vpop.permute.xlu0 %1428  ;;  %v1603_v22 = vpack.c.bf16 %v1573_v40, %v3863_v53 }
 0x392   : > { %v1430_v42 = vsel %vm591_vm5, %v1427_v23, %v1429_v46  ;;  %v1431_v10 = vsel %vm591_vm5, %v1429_v46, %v1427_v23 }
 0x393   : > { %v1435_v50 = vpop.permute.xlu1 %1434  ;;  %1624 = vmatprep.subr.bf16.mxu1 %v1603_v22  ;;  %v1432_v2 = vmul.f32 %v1431_v10, %v3533_v35  ;;  %v1433_v53 = vmul.f32 %v1430_v42, %v3536_v36 }
 0x394   : > { %1625 = vmatpush1.bf16.msra.mxu1 %v1602_v45 }
 0x395   : > { %v1437_v59 = vpop.permute.xlu0 %1436 }
 0x396   : > { %v1438_v60 = vsel %vm608_vm6, %v1435_v50, %v1437_v59  ;;  %v1439_v11 = vsel %vm608_vm6, %v1437_v59, %v1435_v50 }
 0x397   : > { %v1440_v48 = vmul.f32 %v1439_v11, %v3540_v38  ;;  %v1441_v43 = vmul.f32 %v1438_v60, %v3543_v39  ;;  %v1551_v4 = vpop.permute.xlu1 %1550 }
 0x399   : > { %v1476_v49 = vpack.c.bf16 %v1440_v48, %v1432_v2  ;;  %v1553_v47 = vpop.permute.xlu0 %1552  ;;  %v1477_v25 = vpack.c.bf16 %v1441_v43, %v1433_v53 }
 0x39a   : > { %v1554_v28 = vsel %vm591_vm5, %v1551_v4, %v1553_v47  ;;  %v1555_v32 = vsel %vm591_vm5, %v1553_v47, %v1551_v4 }
 0x39b   : > { %v1559_v30 = vpop.permute.xlu1 %1558  ;;  %1505 = vmatprep.subr.bf16.mxu0 %v1477_v25  ;;  %v1556_v37 = vmul.f32 %v1555_v32, %v3533_v35  ;;  %v1557_v26 = vmul.f32 %v1554_v28, %v3536_v36 }
 0x39c   : > { %1506 = vmatpush1.bf16.msra.mxu0 %v1476_v49  ;;  %v1407_v49 = vld [vmem:[%s4231_s5] sm:$0xf] }
 0x39d   : > { %v1561_v24 = vpop.permute.xlu0 %1560 }
 0x39e   : > { %v1562_v33 = vsel %vm608_vm6, %v1559_v30, %v1561_v24  ;;  %v1563_v34 = vsel %vm608_vm6, %v1561_v24, %v1559_v30 }
 0x39f   : > { %v1564_v3 = vmul.f32 %v1563_v34, %v3540_v38  ;;  %v1565_v1 = vmul.f32 %v1562_v33, %v3543_v39  ;;  %v1411_v40 = vpop.permute.xlu1 %1410 }
 0x3a1   : > { %v1600_v23 = vpack.c.bf16 %v1564_v3, %v1556_v37  ;;  %v1413_v45 = vpop.permute.xlu0 %1412  ;;  %v1601_v46 = vpack.c.bf16 %v1565_v1, %v1557_v26  ;;  %v4404_v26 = vld [vmem:[#allocation51_spill] sm:$0xff]  ;;  %v4405_v3 = vld [vmem:[#allocation56_spill] sm:$0xff] }
 0x3a2   : > { %v1414_v50 = vsel %vm557_vm7, %v1411_v40, %v1413_v45  ;;  %v1415_v42 = vsel %vm557_vm7, %v1413_v45, %v1411_v40  ;;  %v4406_v1 = vld [vmem:[#allocation52_spill] sm:$0xff]  ;;  %v4407_v40 = vld [vmem:[#allocation58_spill] sm:$0xff] }
 0x3a3   : > { %v1419_v22 = vpop.permute.xlu1 %1418  ;;  %1626 = vmatprep.subr.bf16.mxu1 %v1601_v46  ;;  %v1416_v39 = vmul.f32 %v1415_v42, %v3573_v15  ;;  %v1417_v10 = vmul.f32 %v1414_v50, %v3576_v16  ;;  %v4409_v45 = vld [vmem:[#allocation60_spill] sm:$0xff]  ;;  %v4410_v46 = vld [vmem:[#allocation55_spill] sm:$0xff]  ;;  %v4412_v50 = vld [vmem:[#allocation57_spill] sm:$0xff] }
 0x3a4   : > { %1627 = vmatpush1.bf16.msra.mxu1 %v1600_v23  ;;  %v4408_v23 = vld [vmem:[#allocation53_spill] sm:$0xff]  ;;  %v4413_v42 = vld [vmem:[#allocation64_spill] sm:$0xff] }
 0x3a5   : > { %v1421_v35 = vpop.permute.xlu0 %1420 }
 0x3a6   : > { %v1422_v36 = vsel %vm574_vm8, %v1419_v22, %v1421_v35  ;;  %v1423_v38 = vsel %vm574_vm8, %v1421_v35, %v1419_v22  ;;  %v4411_v22 = vld [vmem:[#allocation62_spill] sm:$0xff]  ;;  %v4414_v35 = vld [vmem:[#allocation59_spill] sm:$0xff] }
 0x3a7   : > { %v1424_v59 = vmul.f32 %v1423_v38, %v3580_v17  ;;  %v1425_v60 = vmul.f32 %v1422_v36, %v3583_v18  ;;  %v1535_v11 = vpop.permute.xlu1 %1534  ;;  %v4415_v36 = vld [vmem:[#allocation66_spill] sm:$0xff]  ;;  %v4416_v38 = vld [vmem:[#allocation61_spill] sm:$0xff] }
 0x3a9   : > { %v1474_v2 = vpack.c.bf16 %v1424_v59, %v1416_v39  ;;  %v1537_v53 = vpop.permute.xlu0 %1536  ;;  %v1475_v48 = vpack.c.bf16 %v1425_v60, %v1417_v10  ;;  %v4417_v39 = vld [vmem:[#allocation68_spill] sm:$0xff]  ;;  %v4418_v10 = vld [vmem:[#allocation63_spill] sm:$0xff]  ;;  %v4419_v59 = vld [vmem:[#allocation65_spill] sm:$0xff] }
 0x3aa   : > { %v1538_v43 = vsel %vm557_vm7, %v1535_v11, %v1537_v53  ;;  %v1539_v4 = vsel %vm557_vm7, %v1537_v53, %v1535_v11  ;;  %v4420_v60 = vld [vmem:[#allocation67_spill] sm:$0xff]  ;;  %v4421_v11 = vld [vmem:[#allocation69_spill] sm:$0xff] }
 0x3ab   : > { %1507 = vmatprep.subr.bf16.mxu0 %v1475_v48  ;;  %v1543_v47 = vpop.permute.xlu1 %1542  ;;  %v1540_v32 = vmul.f32 %v1539_v4, %v3573_v15  ;;  %v1541_v24 = vmul.f32 %v1538_v43, %v3576_v16  ;;  %v4380_v15 = vld [vmem:[#allocation28_spill] sm:$0xff]  ;;  %v4381_v16 = vld [vmem:[#allocation29_spill] sm:$0xff]  ;;  %v1409_v43 = vld [vmem:[#allocation8 + $0x8] sm:$0xff] }
 0x3ac   : > { %1508 = vmatpush1.bf16.msra.mxu0 %v1474_v2  ;;  %v1408_v48 = vld [vmem:[#allocation8] sm:$0xff] }
 0x3ad   : > { %v1545_v25 = vpop.permute.xlu0 %1544  ;;  %2053 = vmatprep.subr.bf16.mxu0 %v3597_v31 }
 0x3ae   : > { %v1546_v30 = vsel %vm574_vm8, %v1543_v47, %v1545_v25  ;;  %v1547_v28 = vsel %vm574_vm8, %v1545_v25, %v1543_v47 }
 0x3af   : > { %v1548_v33 = vmul.f32 %v1547_v28, %v3580_v17  ;;  %v1549_v34 = vmul.f32 %v1546_v30, %v3583_v18  ;;  %2470 = vmatmul.mubr.msk.bf16.vlgmr.msra.gmra.mxu0 %vm699_vm9, %v1407_v49  ;;  %v4382_v17 = vld [vmem:[#allocation30_spill] sm:$0xff]  ;;  %v4383_v18 = vld [vmem:[#allocation31_spill] sm:$0xff] }
 0x3b0   : > { %2054 = vmatpush1.bf16.msra.mxu0 %v3606_v41  ;;  %v4384_v41 = vld [vmem:[#allocation32_spill] sm:$0xff] }
 0x3b1   : > { %v1598_v37 = vpack.c.bf16 %v1548_v33, %v1540_v32  ;;  %v1599_v31 = vpack.c.bf16 %v1549_v34, %v1541_v24  ;;  %2055 = vmatprep.subr.bf16.mxu0 %v3609_v44  ;;  %v4385_v44 = vld [vmem:[#allocation33_spill] sm:$0xff] }
 0x3b2   : > { %v1659_v33 = vld [vmem:[%s3350_s6] sm:$0xff] }
 0x3b3   : > { %1628 = vmatprep.subr.bf16.mxu1 %v1599_v31  ;;  %v1661_v31 = vld [vmem:[%s3350_s6 + $0x10] sm:$0xff] }
 0x3b4   : > { %1629 = vmatpush1.bf16.msra.mxu1 %v1598_v37  ;;  %2056 = vmatpush1.bf16.msra.mxu0 %v3621_v51  ;;  %v4386_v51 = vld [vmem:[#allocation34_spill] sm:$0xff] }
 0x3b5   : > { %2096 = vmatprep.subr.bf16.mxu1 %v3623_v54  ;;  %2057 = vmatprep.subr.bf16.mxu0 %v3626_v55  ;;  %v4387_v54 = vld [vmem:[#allocation35_spill] sm:$0xff]  ;;  %v4388_v55 = vld [vmem:[#allocation36_spill] sm:$0xff] }
 0x3b7   : > { %2472 = vmatmul.mubr.msk.bf16.vlgmr.msra.gmra.mxu1 %vm699_vm9, %v1407_v49 }
 0x3b8   : > { %2097 = vmatpush1.bf16.msra.mxu1 %v3628_v56  ;;  %2058 = vmatpush1.bf16.msra.mxu0 %v3631_v57  ;;  %v4389_v56 = vld [vmem:[#allocation37_spill] sm:$0xff]  ;;  %v4390_v57 = vld [vmem:[#allocation38_spill] sm:$0xff] }
 0x3b9   : > { %2098 = vmatprep.subr.bf16.mxu1 %v3634_v58  ;;  %2059 = vmatprep.subr.bf16.mxu0 %v3637_v61  ;;  %v4391_v58 = vld [vmem:[#allocation39_spill] sm:$0xff]  ;;  %v4392_v61 = vld [vmem:[#allocation40_spill] sm:$0xff] }
 0x3bc   : > { %2099 = vmatpush1.bf16.msra.mxu1 %v3641_v62  ;;  %2060 = vmatpush1.bf16.msra.mxu0 %v3644_v63  ;;  %v4393_v62 = vld [vmem:[#allocation41_spill] sm:$0xff]  ;;  %v4394_v63 = vld [vmem:[#allocation42_spill] sm:$0xff] }
 0x3bd   : > { %2100 = vmatprep.subr.bf16.mxu1 %v3647_v5  ;;  %2061 = vmatprep.subr.bf16.mxu0 %v3650_v7  ;;  %v4395_v5 = vld [vmem:[#allocation43_spill] sm:$0xff]  ;;  %v4396_v7 = vld [vmem:[#allocation44_spill] sm:$0xff] }
 0x3c0   : > { %2101 = vmatpush1.bf16.msra.mxu1 %v3653_v8  ;;  %2062 = vmatpush1.bf16.msra.mxu0 %v3656_v12  ;;  %v4397_v8 = vld [vmem:[#allocation45_spill] sm:$0xff]  ;;  %v4398_v12 = vld [vmem:[#allocation46_spill] sm:$0xff] }
 0x3c1   : > { %2102 = vmatprep.subr.bf16.mxu1 %v3659_v13  ;;  %2063 = vmatprep.subr.bf16.mxu0 %v3662_v14  ;;  %v4399_v13 = vld [vmem:[#allocation47_spill] sm:$0xff]  ;;  %v4400_v14 = vld [vmem:[#allocation48_spill] sm:$0xff] }
 0x3c4   : > { %2103 = vmatpush1.bf16.msra.mxu1 %v3665_v19  ;;  %2064 = vmatpush1.bf16.msra.mxu0 %v3668_v20  ;;  %v4401_v19 = vld [vmem:[#allocation49_spill] sm:$0xff]  ;;  %v4402_v20 = vld [vmem:[#allocation50_spill] sm:$0xff] }
 0x3c5   : > { %2104 = vmatprep.subr.bf16.mxu1 %v3671_v21  ;;  %2065 = vmatprep.subr.bf16.mxu0 %v4379_v6  ;;  %v4403_v21 = vld [vmem:[#allocation54_spill] sm:$0xff] }
 0x3c8   : > { %2105 = vmatpush1.bf16.msra.mxu1 %v4380_v15  ;;  %2066 = vmatpush1.bf16.msra.mxu0 %v4381_v16  ;;  %v1660_v15 = vld [vmem:[%s3350_s6 + $0x8] sm:$0xff]  ;;  %v1662_v16 = vld [vmem:[%s3350_s6 + $0x18] sm:$0xff] }
 0x3c9   : > { %2106 = vmatprep.subr.bf16.mxu1 %v4382_v17  ;;  %2067 = vmatprep.subr.bf16.mxu0 %v4383_v18 }
 0x3cc   : > { %2107 = vmatpush1.bf16.msra.mxu1 %v4384_v41  ;;  %2068 = vmatpush1.bf16.msra.mxu0 %v4385_v44 }
 0x3cd   : > { %2108 = vmatprep.subr.bf16.mxu1 %v4386_v51  ;;  %2069 = vmatprep.subr.bf16.mxu0 %v4387_v54 }
 0x3d0   : > { %2109 = vmatpush1.bf16.msra.mxu1 %v4388_v55  ;;  %2070 = vmatpush2.bf16.msra.mxu0 %v4389_v56 }
 0x3d1   : > { %2110 = vmatprep.subr.bf16.mxu1 %v4390_v57  ;;  %2071 = vmatprep.subr.bf16.mxu0 %v4391_v58 }
 0x3d4   : > { %2111 = vmatpush1.bf16.msra.mxu1 %v4392_v61  ;;  %2072 = vmatpush2.bf16.msra.mxu0 %v4393_v62 }
 0x3d5   : > { %2112 = vmatprep.subr.bf16.mxu1 %v4394_v63  ;;  %2073 = vmatprep.subr.bf16.mxu0 %v4395_v5 }
 0x3d8   : > { %2113 = vmatpush2.bf16.msra.mxu1 %v4396_v7  ;;  %2074 = vmatpush2.bf16.msra.mxu0 %v4397_v8 }
 0x3d9   : > { %2114 = vmatprep.subr.bf16.mxu1 %v4398_v12  ;;  %2075 = vmatprep.subr.bf16.mxu0 %v4399_v13 }
 0x3dc   : > { %2115 = vmatpush2.bf16.msra.mxu1 %v4400_v14  ;;  %2076 = vmatpush2.bf16.msra.mxu0 %v4401_v19 }
 0x3dd   : > { %2116 = vmatprep.subr.bf16.mxu1 %v4402_v20  ;;  %2077 = vmatprep.subr.bf16.mxu0 %v4403_v21 }
 0x3e0   : > { %2117 = vmatpush2.bf16.msra.mxu1 %v4404_v26  ;;  %2078 = vmatpush2.bf16.msra.mxu0 %v4405_v3 }
 0x3e1   : > { %2118 = vmatprep.subr.bf16.mxu1 %v4406_v1  ;;  %2079 = vmatprep.subr.bf16.mxu0 %v4407_v40 }
 0x3e4   : > { %2119 = vmatpush2.bf16.msra.mxu1 %v4408_v23  ;;  %2080 = vmatpush2.bf16.msra.mxu0 %v4409_v45 }
 0x3e5   : > { %2120 = vmatprep.subr.bf16.mxu1 %v4410_v46  ;;  %2081 = vmatprep.subr.bf16.mxu0 %v4411_v22 }
 0x3e8   : > { %2121 = vmatpush2.bf16.msra.mxu1 %v4412_v50  ;;  %2082 = vmatpush2.bf16.msra.mxu0 %v4413_v42 }
 0x3e9   : > { %2122 = vmatprep.subr.bf16.mxu1 %v4414_v35  ;;  %2083 = vmatprep.subr.bf16.mxu0 %v4415_v36 }
 0x3ec   : > { %2123 = vmatpush2.bf16.msra.mxu1 %v4416_v38  ;;  %2084 = vmatpush2.bf16.msra.mxu0 %v4417_v39 }
 0x3ed   : > { %2124 = vmatprep.subr.bf16.mxu1 %v4418_v10 }
 0x3f0   : > { %2125 = vmatpush2.bf16.msra.mxu1 %v4419_v59 }
 0x3f1   : > { %2126 = vmatprep.subr.bf16.mxu1 %v4420_v60 }
 0x3f4   : > { %2127 = vmatpush2.bf16.msra.mxu1 %v4421_v11 }
 0x46f   : > { %v1527_v2 = vpop.f32.mrf.mxu0 }
 0x470   : > { %v1528_v49 = vadd.f32 %v1527_v2, %v1408_v48 }
 0x471   : > { %v1529_v53 = vpop.f32.mrf.mxu0 }
 0x472   : > { %v1530_v25 = vadd.f32 %v1529_v53, %v1409_v43  ;;  %v1655_v32 = vmax.f32 %v1528_v49, 0.0 }
 0x473   : > { %v1531_v4 = vpop.f32.mrf.mxu0 }
 0x474   : > { %v1656_v34 = vmax.f32 %v1530_v25, 0.0  ;;  %v1663_v41 = vadd.f32 %v1659_v33, %v1655_v32 }
 0x475   : > { %v1532_v47 = vpop.f32.mrf.mxu0 }
 0x476   : > { %v1664_v54 = vadd.f32 %v1660_v15, %v1656_v34 }
 0x477   : > { %v1648_v30 = vpop.f32.mrf.mxu1 }
 0x478   : > { %v1649_v28 = vadd.f32 %v1648_v30, %v1408_v48 }
 0x479   : > { %v1650_v24 = vpop.f32.mrf.mxu1 }
 0x47a   : > { %v1657_v37 = vmax.f32 %v1649_v28, 0.0  ;;  %v1651_v6 = vadd.f32 %v1650_v24, %v1409_v43 }
 0x47b   : > { %v1652_v17 = vpop.f32.mrf.mxu1 }
 0x47c   : > { %v1658_v18 = vmax.f32 %v1651_v6, 0.0  ;;  %v1665_v44 = vadd.f32 %v1661_v31, %v1657_v37 }
 0x47d   : > { %v1653_v51 = vpop.f32.mrf.mxu1 }
 0x47e   : > { %v1666_v55 = vadd.f32 %v1662_v16, %v1658_v18  ;;  %v1667_v57 = vpack.c.bf16 %v1665_v44, %v1663_v41 }
 0x480   : > { %v1668_v56 = vpack.c.bf16 %v1666_v55, %v1664_v54 }
 0x482   : > { %2085 = vmatprep.mubr.bf16.mxu0 %v1668_v56  ;;  %2128 = vmatprep.mubr.bf16.mxu1 %v1668_v56 }
 0x483   : > { %2086 = vmatmul.mubr.bf16.vlgmr.msra.gmra.mxu0 %v1667_v57  ;;  %2129 = vmatmul.mubr.bf16.vlgmr.msra.gmra.mxu1 %v1667_v57 }
 0x484   : > { %2927 = shalt.err (!%p2924_p10)
}
 0x485   : > { %s2928_s27 = scalar_lea.hbm %s4123_s16, 512  ;;  %s2932_s14 = scalar_lea.hbm %s4422_s1, 1024 }
 0x486   : > { %p2929_p5 = scmp.ne.s32.totalorder %s4123_s16, %s2928_s27  ;;  %p2933_p4 = scmp.lt.s32.totalorder %s4123_s16, %s4422_s1 }
 0x487   : > { %p2934_p12 = scmp.lt.s32.totalorder %s2932_s14, %s2928_s27 }
 0x488   : > { %p2930_p2 = pnand %p2929_p5, %p4423_p0 }
 0x489   : > { %p2935_p6 = por %p2934_p12, %p2933_p4 }
 0x48a   : > { %p2931_p8 = pneg %p2930_p2 }
 0x48c   : > { %p2936_p13 = pnand %p2935_p6, %p2931_p8 }
 0x48e   : > { %2939 = shalt.err (!%p2936_p13)
}
 0x48f   : > { %s3040_s15 = smov 256   ;;  %s527_s6 = scalar_lea.vmem [#allocation13], %s3333_s26 }
 0x490   : > { %2569 = dma.vmem_to_hbm [thread:$0]  (%p4423_p0), %s4126_s30, 512, %s4123_s16, %s2169_s25, %s3040_s15, %s3040_s15, %s3038_s11  }
 0x491   : > { %s2182_s16 = sshll.u32 %s527_s6, 4  ;;  %s4424_s13 = sld [smem:[#allocation73_spill]]  ;;  %s4182_s16 = int_to_ptr.vmem [resolvable:$true] %s2182_s16 }
 0x492   : > { %s2164_s26 = scalar_lea.sflag [#allocation4], %s3330_s17  ;;  %s2940_s24 = scalar_lea.vmem %s4182_s16, 512 }
 0x493   : > { %p2941_p7 = scmp.ne.s32.totalorder %s4182_s16, %s2940_s24  ;;  %s3041_s12 = smov [#allocation13]  }
 0x494   : > { %s2944_s21 = sshll.u32 %s3041_s12, 4  ;;  %s2945_s21 = int_to_ptr.vmem [resolvable:$false] %s2944_s21 }
 0x495   : > { %p2942_p1 = pnand %p2941_p7, %p4423_p0  ;;  %s2946_s27 = scalar_lea.vmem %s2945_s21, 1024 }
 0x496   : > { %p2947_p3 = scmp.lt.s32.totalorder %s4182_s16, %s2945_s21  ;;  %p2948_p9 = scmp.lt.s32.totalorder %s2946_s27, %s2940_s24 }
 0x497   : > { %s4180_s23 = scalar_lea.hbm %s4424_s13, %s2548_s20  ;;  %p2943_p11 = pneg %p2942_p1 }
 0x498   : > { %p2949_p10 = por %p2948_p9, %p2947_p3 }
 0x49a   : > { %p2950_p5 = pnand %p2949_p10, %p2943_p11 }
 0x543   : > { %v2087_v58 = vpop.f32.mrf.mxu0  ;;  %v2130_v61 = vpop.f32.mrf.mxu1 }
 0x544   : > { %v2139_v7 = vrot.slane %v2130_v61, 4 }
 0x545   : > { %v2132_v62 = vpop.f32.mrf.mxu1  ;;  %v2089_v63 = vpop.f32.mrf.mxu0 }
 0x546   : > { %v2140_v13 = vrot.slane %v2132_v62, 4 }
 0x547   : > { %v2134_v5 = vpop.f32.mrf.mxu1  ;;  %v2091_v21 = vpop.f32.mrf.mxu0 }
 0x548   : > { %v2141_v8 = vrot.slane %v2134_v5, 4 }
 0x549   : > { %v2136_v12 = vpop.f32.mrf.mxu1  ;;  %v2093_v38 = vpop.f32.mrf.mxu0 }
 0x54a   : > { %v2143_v14 = vsel %vm1362_vm12, %v2139_v7, %v2141_v8  ;;  %v2145_v19 = vsel %vm1362_vm12, %v2141_v8, %v2139_v7  ;;  %v2142_v20 = vrot.slane %v2136_v12, 4 }
 0x54b   : > { %v2147_v26 = vsel %vm1375_vm14, %v2143_v14, %v2145_v19  ;;  %v2149_v3 = vsel %vm1376_vm13, %v2145_v19, %v2143_v14 }
 0x54c   : > { %v2151_v1 = vmul.f32 %v2147_v26, %v3839_v52  ;;  %v2153_v40 = vmul.f32 %v2149_v3, %v3833_v27  ;;  %v2144_v23 = vsel %vm1362_vm12, %v2140_v13, %v2142_v20  ;;  %v2146_v45 = vsel %vm1362_vm12, %v2142_v20, %v2140_v13 }
 0x54d   : > { %v2148_v46 = vsel %vm1375_vm14, %v2144_v23, %v2146_v45  ;;  %v2150_v22 = vsel %vm1376_vm13, %v2146_v45, %v2144_v23 }
 0x54e   : > { %v2155_v50 = vadd.f32 %v2151_v1, %v2087_v58  ;;  %v2157_v42 = vadd.f32 %v2153_v40, %v2091_v21  ;;  %v2152_v35 = vmul.f32 %v2148_v46, %v3839_v52  ;;  %v2154_v36 = vmul.f32 %v2150_v22, %v3833_v27 }
 0x550   : > { %2159 = vst [vmem:[%s527_s6] sm:$0xff] %v2155_v50  ;;  %2161 = vst [vmem:[%s527_s6 + $0x10] sm:$0xff] %v2157_v42  ;;  %v2156_v9 = vadd.f32 %v2152_v35, %v2089_v63  ;;  %v2158_v39 = vadd.f32 %v2154_v36, %v2093_v38 }
 0x552   : > { %2160 = vst [vmem:[%s527_s6 + $0x8] sm:$0xff] %v2156_v9  ;;  %2162 = vst [vmem:[%s527_s6 + $0x18] sm:$0xff] %v2158_v39 }
 0x553   : > { %2953 = shalt.err (!%p2950_p5)
}
 0x554   : > { %s2954_s20 = scalar_lea.hbm %s4180_s23, 512  ;;  %s2958_s22 = scalar_lea.hbm %s4424_s13, 1024 }
 0x555   : > { %p2955_p2 = scmp.ne.s32.totalorder %s4180_s23, %s2954_s20  ;;  %p2959_p12 = scmp.lt.s32.totalorder %s4180_s23, %s4424_s13 }
 0x556   : > { %p2960_p6 = scmp.lt.s32.totalorder %s2958_s22, %s2954_s20 }
 0x557   : > { %p2956_p8 = pnand %p2955_p2, %p4423_p0 }
 0x558   : > { %p2961_p13 = por %p2960_p6, %p2959_p12 }
 0x559   : > { %p2957_p4 = pneg %p2956_p8 }
 0x55b   : > { %p2962_p7 = pnand %p2961_p13, %p2957_p4 }
 0x55d   : > { %2965 = shalt.err (!%p2962_p7)
}
 0x55e   : > { %2568 = dma.vmem_to_hbm [thread:$0]  (%p4423_p0), %s4182_s16, 512, %s4180_s23, %s2164_s26, %s3040_s15, %s3040_s15, %s3038_s11  }
 0x55f PF: > { %s4425_s10 = sld [smem:[#allocation22_spill]] }
 0x560   : > { %s4426_s6 = sld [smem:[#allocation26_spill]] }
 0x561   : > { %s4427_s30 = sld [smem:[#allocation23_spill]] }
 0x565   : > { %s2213_s25 = sand.u32 1, %s4425_s10  }
 0x566   : > { %p4428_p1 = scmp.ne.s32.totalorder %s4426_s6, 0  ;;  %s2214_s24 = scalar_lea.sflag [#allocation4], %s2213_s25 }
 0x567   : > { %p4429_p11 = scmp.ge.s32.totalorder %s4427_s30, 2 }
 0x569   : > { %p2593_p3 = pnand %p4429_p11, %p4428_p1 }
 0x56b   : > { %p2594_p9 = pneg %p2593_p3 }
 0x56d   : > { %2999 = dma.done.wait (%p2594_p9), %s2214_s24, 512  }
 0x56e   : > { %3001 = vsyncadd (%p2594_p9), %s2214_s24, 4294966784  ;;  %s2223_s12 = scalar_lea.sflag [#allocation15], %s2213_s25 }
 0x56f   : > { %3003 = dma.done.wait (%p2594_p9), %s2223_s12, 512  }
 0x570   : > { %3005 = vsyncadd (%p2594_p9), %s2223_s12, 4294966784  ;;  %s4430_s20 = sld [smem:[#allocation24_spill]]  ;;  %s4432_s17 = smov %s3012_s18 }
 0x571   : > { %s4431_s29 = sld [smem:[#allocation25_spill]]  ;;  %s4433_s18 = smov %s3016_s19 }
 0x576   : > { %p33_p0 = scmp.ge.s32.totalorder %s4430_s20, 4  }
 0x577   : > { %s4434_s19 = smov %s4431_s29 }
 0x578   :  { %35 = sbr.rel (!%p33_p0) target bundleno = 17 (0x11), region = 158 }
 0x57d   :  { %2228 = vsyncpa [#allocation3], 1 }
 0x57e   :  { %2230 = vsyncpa [#allocation3 + $0x1], 1 }
 0x57f   :  { %2231 = vsyncpa [#allocation6], 1 }
 0x580   :  { %2233 = vsyncpa [#allocation6 + $0x1], 1 }
 0x581   :  { %2234 = vsyncpa [#allocation9], 1 }
 0x582   :  { %2235 = vsyncpa [#allocation12], 1 }
 0x583   :  { %2236 = vsyncpa [#allocation4], 1 }
 0x584   :  { %2238 = vsyncpa [#allocation4 + $0x1], 1 }
 0x585   :  { %2239 = vsyncpa [#allocation15], 1 }
 0x586   :  { %2241 = vsyncpa [#allocation15 + $0x1], 1 }

</bundles_post_ra>
